<compile_context>
chip_gen: v6e
topology: v6e:2x2x1
jax: 0.10.0
libtpu: 0.0.40
codegen_flags: <defaults>
</compile_context>

<pallas_src>
import jax
import jax.numpy as jnp
import numpy as np
from jax import lax
from jax.experimental import pallas as pl
from jax.experimental.pallas import tpu as pltpu


def _round_up(x, m):
    return (x + m - 1) // m * m


def _pick_block(total, want):
    """Largest multiple-of-128 divisor of `total` that is <= max(want, 128)."""
    want = max(want, 128)
    if total <= want:
        return total
    best = 128
    d = 128
    while d <= want:
        if total % d == 0:
            best = d
        d += 128
    return best


def _vmem_spec():
    # Full-array, resident-in-VMEM input (single buffered, no pipelining).
    return pl.BlockSpec(memory_space=pltpu.MemorySpace.VMEM)


# ----------------------------------------------------------------------------
# Kernel 1: GRU recurrence.  One grid step == `block_t` timesteps.
# PyTorch packed gate order is [r, z, n]; each gate occupies Hp (=128-aligned)
# lanes of the packed 3*Hp weight so every slice below is lane-aligned.
# ----------------------------------------------------------------------------
def _gru_seq_kernel(x_ref, h0_ref, wih_ref, whh_ref, brz_ref, bin_ref, bhn_ref,
                    hseq_ref, h_scr):
    Hp = h_scr.shape[1]
    bt = x_ref.shape[0]

    @pl.when(pl.program_id(0) == 0)
    def _():
        h_scr[...] = h0_ref[...]                      # f32 carry

    wih = wih_ref[...]                                # (Ep, 3Hp) compute dtype
    whh = whh_ref[...]                                # (Hp, 3Hp) compute dtype
    brz = brz_ref[...]                                # (1, 2Hp) f32 (b_ih+b_hh folded)
    b_in = bin_ref[...]                               # (1, Hp)  f32
    b_hn = bhn_ref[...]                               # (1, Hp)  f32

    def step(i, h):                                   # h: (Bp, Hp) f32
        x = x_ref[i]                                  # (Bp, Ep) compute dtype
        gi = jnp.dot(x, wih, preferred_element_type=jnp.float32)
        gh = jnp.dot(h.astype(whh.dtype), whh, preferred_element_type=jnp.float32)
        rz = jax.nn.sigmoid(gi[:, :2 * Hp] + gh[:, :2 * Hp] + brz)
        r = rz[:, :Hp]
        z = rz[:, Hp:]
        n = jnp.tanh(gi[:, 2 * Hp:] + b_in + r * (gh[:, 2 * Hp:] + b_hn))
        h_new = (1.0 - z) * n + z * h                 # f32 gate math (v5e-friendly)
        hseq_ref[i] = h_new.astype(hseq_ref.dtype)
        return h_new

    h_scr[...] = lax.fori_loop(0, bt, step, h_scr[...], unroll=True)


def _gru_pallas(x, h0, wih_t, whh_t, b_rz, b_in, b_hn, *, block_t, compute_dtype):
    Tp, Bp, Ep = x.shape
    Hp = whh_t.shape[0]
    n_tb = Tp // block_t

    return pl.pallas_call(
        _gru_seq_kernel,
        out_shape=jax.ShapeDtypeStruct((Tp, Bp, Hp), compute_dtype),
        grid=(n_tb,),
        in_specs=[
            pl.BlockSpec((block_t, Bp, Ep), lambda t: (t, 0, 0)),  # x time-block
            _vmem_spec(),   # h0
            _vmem_spec(),   # W_ih^T (packed, gate-padded)
            _vmem_spec(),   # W_hh^T (packed, gate-padded)
            _vmem_spec(),   # folded r/z bias
            _vmem_spec(),   # b_ih (n gate)
            _vmem_spec(),   # b_hh (n gate)
        ],
        out_specs=pl.BlockSpec((block_t, Bp, Hp), lambda t: (t, 0, 0)),
        scratch_shapes=[pltpu.VMEM((Bp, Hp), jnp.float32)],
        compiler_params=pltpu.CompilerParams(
            dimension_semantics=("arbitrary",),       # sequential recurrence
        ),
    )(x, h0, wih_t, whh_t, b_rz, b_in, b_hn)


# ----------------------------------------------------------------------------
# Kernel 2: output projection, batched over (block_t * Bp) rows per grid step,
# tiled over the vocab dimension.
# ----------------------------------------------------------------------------
def _proj_kernel(h_ref, w_ref, b_ref, o_ref):
    bt, Bp, Hp = h_ref.shape
    h2d = h_ref[...].reshape(bt * Bp, Hp)             # one big MXU matmul
    logits = jnp.dot(h2d, w_ref[...], preferred_element_type=jnp.float32) + b_ref[...]
    o_ref[...] = logits.reshape(bt, Bp, -1).astype(o_ref.dtype)


def _proj_pallas(hseq, wout_t, bout, *, block_t, block_v):
    Tp, Bp, Hp = hseq.shape
    Vp = wout_t.shape[1]

    return pl.pallas_call(
        _proj_kernel,
        out_shape=jax.ShapeDtypeStruct((Tp, Bp, Vp), jnp.float32),
        grid=(Tp // block_t, Vp // block_v),
        in_specs=[
            pl.BlockSpec((block_t, Bp, Hp), lambda t, v: (t, 0, 0)),
            pl.BlockSpec((Hp, block_v), lambda t, v: (0, v)),
            pl.BlockSpec((1, block_v), lambda t, v: (0, v)),
        ],
        out_specs=pl.BlockSpec((block_t, Bp, block_v), lambda t, v: (t, 0, v)),
        compiler_params=pltpu.CompilerParams(
            dimension_semantics=("parallel", "parallel"),
        ),
    )(hseq, wout_t, bout)


# ----------------------------------------------------------------------------
# Parameter preparation: pad / transpose / pack into the TPU-friendly layout.
# ----------------------------------------------------------------------------
def prepare_decoder_params(params, *, compute_dtype=jnp.bfloat16):
    E = params["w_ih"].shape[1]
    H = params["w_hh"].shape[1]
    V = params["w_out"].shape[0]
    Ep, Hp, Vp = _round_up(E, 128), _round_up(H, 128), _round_up(V, 128)

    wih_t = jnp.zeros((Ep, 3 * Hp), jnp.float32)
    whh_t = jnp.zeros((Hp, 3 * Hp), jnp.float32)
    b_ih = jnp.zeros((1, 3 * Hp), jnp.float32)
    b_hh = jnp.zeros((1, 3 * Hp), jnp.float32)
    for g in range(3):  # torch gate order [r, z, n]
        wih_t = wih_t.at[:E, g * Hp:g * Hp + H].set(params["w_ih"][g * H:(g + 1) * H, :].T)
        whh_t = whh_t.at[:H, g * Hp:g * Hp + H].set(params["w_hh"][g * H:(g + 1) * H, :].T)
        b_ih = b_ih.at[0, g * Hp:g * Hp + H].set(params["b_ih"][g * H:(g + 1) * H])
        b_hh = b_hh.at[0, g * Hp:g * Hp + H].set(params["b_hh"][g * H:(g + 1) * H])

    wout_t = jnp.zeros((Hp, Vp), jnp.float32).at[:H, :V].set(params["w_out"].T)
    bout = jnp.zeros((1, Vp), jnp.float32).at[0, :V].set(params["b_out"])

    return {
        "wih_t": wih_t.astype(compute_dtype),
        "whh_t": whh_t.astype(compute_dtype),
        "b_rz": b_ih[:, :2 * Hp] + b_hh[:, :2 * Hp],   # folded once (f32)
        "b_in": b_ih[:, 2 * Hp:],                       # f32
        "b_hn": b_hh[:, 2 * Hp:],                       # f32
        "wout_t": wout_t.astype(compute_dtype),
        "bout": bout,                                   # f32
        "dims": (E, H, V, Ep, Hp, Vp),
    }


# ----------------------------------------------------------------------------
# Wrapper matching Decoder.forward semantics.
# ----------------------------------------------------------------------------
def decoder_forward(params, input_ids, hidden=None, *,
                    compute_dtype=jnp.bfloat16, block_t=16, block_v=512):
    """input_ids: (B, T) int32.  Returns (out (B,T,V) f32, hidden (1,B,H) f32)."""
    emb = jnp.take(params["embed"], input_ids, axis=0)        # (B, T, E) glue gather
    B, T, E = emb.shape

    prep = prepare_decoder_params(params, compute_dtype=compute_dtype)
    _, H, V, Ep, Hp, Vp = prep["dims"]

    bt = min(block_t, T)
    Tp = _round_up(T, bt)
    Bp = _round_up(B, 8)

    # Padded, time-major input (single pad+transpose copy; padded lanes are 0).
    x = jnp.zeros((Tp, Bp, Ep), compute_dtype)
    x = x.at[:T, :B, :E].set(jnp.transpose(emb, (1, 0, 2)).astype(compute_dtype))

    h0 = jnp.zeros((Bp, Hp), jnp.float32)
    if hidden is not None:                                     # torch hidden is (1, B, H)
        h0 = h0.at[:B, :H].set(hidden.reshape(B, H).astype(jnp.float32))

    hseq = _gru_pallas(x, h0, prep["wih_t"], prep["whh_t"],
                       prep["b_rz"], prep["b_in"], prep["b_hn"],
                       block_t=bt, compute_dtype=compute_dtype)    # (Tp, Bp, Hp)

    bv = _pick_block(Vp, block_v)
    logits_p = _proj_pallas(hseq, prep["wout_t"], prep["bout"],
                            block_t=bt, block_v=bv)                # (Tp, Bp, Vp) f32

    out = jnp.transpose(logits_p[:T, :B, :V], (1, 0, 2))           # (B, T, V)
    h_fin = hseq[T - 1, :B, :H].astype(jnp.float32)[None]          # (1, B, H)
    return out, h_fin


# ----------------------------------------------------------------------------
# Deterministic parameter init (PyTorch-like layouts: W_ih (3H,E), W_hh (3H,H),
# W_out (V,H), uniform(-1/sqrt(H), 1/sqrt(H)) for GRU/Linear, N(0,1) embedding).
# ----------------------------------------------------------------------------
def init_params(key, vocab_size, embed_size, hidden_dim):
    ks = jax.random.split(key, 7)
    k = 1.0 / np.sqrt(hidden_dim)
    H3 = 3 * hidden_dim
    return {
        "embed": jax.random.normal(ks[0], (vocab_size, embed_size), jnp.float32),
        "w_ih": jax.random.uniform(ks[1], (H3, embed_size), jnp.float32, -k, k),
        "w_hh": jax.random.uniform(ks[2], (H3, hidden_dim), jnp.float32, -k, k),
        "b_ih": jax.random.uniform(ks[3], (H3,), jnp.float32, -k, k),
        "b_hh": jax.random.uniform(ks[4], (H3,), jnp.float32, -k, k),
        "w_out": jax.random.uniform(ks[5], (vocab_size, hidden_dim), jnp.float32, -k, k),
        "b_out": jax.random.uniform(ks[6], (vocab_size,), jnp.float32, -k, k),
    }


# ----------------------------------------------------------------------------
# Pure-JAX reference (lax.scan GRU) for correctness cross-checks.
# ----------------------------------------------------------------------------
def decoder_forward_ref(params, input_ids, hidden=None):
    emb = jnp.take(params["embed"], input_ids, axis=0)
    B, T, E = emb.shape
    H = params["w_hh"].shape[1]
    h0 = jnp.zeros((B, H), jnp.float32) if hidden is None else hidden.reshape(B, H)
    wih_t, whh_t = params["w_ih"].T, params["w_hh"].T

    def step(h, x):
        gi = x @ wih_t + params["b_ih"]
        gh = h @ whh_t + params["b_hh"]
        r = jax.nn.sigmoid(gi[:, :H] + gh[:, :H])
        z = jax.nn.sigmoid(gi[:, H:2 * H] + gh[:, H:2 * H])
        n = jnp.tanh(gi[:, 2 * H:] + r * gh[:, 2 * H:])
        h_new = (1.0 - z) * n + z * h
        return h_new, h_new

    h_fin, hs = lax.scan(step, h0, jnp.transpose(emb, (1, 0, 2)))
    out = jnp.transpose(hs, (1, 0, 2)) @ params["w_out"].T + params["b_out"]
    return out, h_fin[None]


if __name__ == "__main__":
    vocab_size, embed_size, hidden_dim = 32, 16, 32
    B, T = 2, 8

    key = jax.random.PRNGKey(0)
    pkey, ikey, hkey = jax.random.split(key, 3)
    params = init_params(pkey, vocab_size, embed_size, hidden_dim)

    input_ids = jax.random.randint(ikey, (B, T), 0, vocab_size, dtype=jnp.int32)
    hidden_in = jax.random.normal(hkey, (1, B, hidden_dim), jnp.float32)

    # Performance path (bf16 MXU operands, f32 accumulation / gate math).
    out1, h1 = decoder_forward(params, input_ids, hidden=None)
    out2, h2 = decoder_forward(params, input_ids, hidden=hidden_in)
    jax.block_until_ready((out1, h1, out2, h2))

    # Same kernels, f32 compute path (exact structural check).
    out1f, h1f = decoder_forward(params, input_ids, hidden=None, compute_dtype=jnp.float32)
    out2f, h2f = decoder_forward(params, input_ids, hidden=hidden_in, compute_dtype=jnp.float32)
    jax.block_until_ready((out1f, h1f, out2f, h2f))

    # Pure-JAX reference.
    ro1, rh1 = decoder_forward_ref(params, input_ids, hidden=None)
    ro2, rh2 = decoder_forward_ref(params, input_ids, hidden=hidden_in)

    # f32 kernel path must match the f32 reference tightly.
    np.testing.assert_allclose(np.asarray(out1f), np.asarray(ro1), atol=1e-4, rtol=1e-4)
    np.testing.assert_allclose(np.asarray(h1f), np.asarray(rh1), atol=1e-4, rtol=1e-4)
    np.testing.assert_allclose(np.asarray(out2f), np.asarray(ro2), atol=1e-4, rtol=1e-4)
    np.testing.assert_allclose(np.asarray(h2f), np.asarray(rh2), atol=1e-4, rtol=1e-4)

    # bf16 perf path: same semantics, looser tolerance from bf16 MXU operands.
    np.testing.assert_allclose(np.asarray(out1), np.asarray(ro1), atol=1e-1, rtol=1e-1)
    np.testing.assert_allclose(np.asarray(h1), np.asarray(rh1), atol=1e-1, rtol=1e-1)
    np.testing.assert_allclose(np.asarray(out2), np.asarray(ro2), atol=1e-1, rtol=1e-1)
    np.testing.assert_allclose(np.asarray(h2), np.asarray(rh2), atol=1e-1, rtol=1e-1)

    assert out1.shape == (B, T, vocab_size) and h1.shape == (1, B, hidden_dim)
    assert out2.shape == (B, T, vocab_size) and h2.shape == (1, B, hidden_dim)
    print("KERNEL_OK")
</pallas_src>

<mosaic_0001>
module attributes {stable_mosaic.version = 11 : i64} {
  func.func @_gru_seq_kernel(%arg0: i32, %arg1: memref<8x8x128xbf16, #tpu.memory_space<vmem>>, %arg2: memref<8x128xf32, #tpu.memory_space<vmem>>, %arg3: memref<128x384xbf16, #tpu.memory_space<vmem>>, %arg4: memref<128x384xbf16, #tpu.memory_space<vmem>>, %arg5: memref<1x256xf32, #tpu.memory_space<vmem>>, %arg6: memref<1x128xf32, #tpu.memory_space<vmem>>, %arg7: memref<1x128xf32, #tpu.memory_space<vmem>>, %arg8: memref<8x8x128xbf16, #tpu.memory_space<vmem>>, %arg9: memref<8x128xf32, #tpu.memory_space<vmem>>) attributes {dimension_semantics = [#tpu.dimension_semantics<arbitrary>], iteration_bounds = array<i64: 1>, scalar_prefetch = 0 : i64, scratch_operands = 1 : i64, tpu.core_type = #tpu.core_type<tc>, window_params = [{transform_indices = @transform_0, window_bounds = array<i64: 8, 8, 128>}, {pipeline_mode = #tpu.pipeline_mode<synchronous>, transform_indices = @transform_1, window_bounds = array<i64: 8, 128>}, {pipeline_mode = #tpu.pipeline_mode<synchronous>, transform_indices = @transform_2, window_bounds = array<i64: 128, 384>}, {pipeline_mode = #tpu.pipeline_mode<synchronous>, transform_indices = @transform_3, window_bounds = array<i64: 128, 384>}, {pipeline_mode = #tpu.pipeline_mode<synchronous>, transform_indices = @transform_4, window_bounds = array<i64: 1, 256>}, {pipeline_mode = #tpu.pipeline_mode<synchronous>, transform_indices = @transform_5, window_bounds = array<i64: 1, 128>}, {pipeline_mode = #tpu.pipeline_mode<synchronous>, transform_indices = @transform_6, window_bounds = array<i64: 1, 128>}, {transform_indices = @transform_7, window_bounds = array<i64: 8, 8, 128>}]} {
    %c0_i32 = arith.constant 0 : i32
    %0 = arith.cmpi eq, %arg0, %c0_i32 : i32
    %1 = arith.extui %0 : i1 to i32
    %c0_i32_0 = arith.constant 0 : i32
    %2 = arith.cmpi ne, %1, %c0_i32_0 : i32
    scf.if %2 {
      %c0_78 = arith.constant 0 : index
      %c0_79 = arith.constant 0 : index
      %306 = vector.load %arg2[%c0_78, %c0_79] : memref<8x128xf32, #tpu.memory_space<vmem>>, vector<8x128xf32>
      %c0_80 = arith.constant 0 : index
      %c0_81 = arith.constant 0 : index
      %307 = vector.load %arg9[%c0_80, %c0_81] : memref<8x128xf32, #tpu.memory_space<vmem>>, vector<8x128xf32>
      tpu.vector_store %arg9[%c0_80, %c0_81], %306 {strides = array<i32>} : memref<8x128xf32, #tpu.memory_space<vmem>>, vector<8x128xf32>,
    } else {
    }
    %c0 = arith.constant 0 : index
    %c0_1 = arith.constant 0 : index
    %3 = vector.load %arg3[%c0, %c0_1] : memref<128x384xbf16, #tpu.memory_space<vmem>>, vector<128x384xbf16>
    %c0_2 = arith.constant 0 : index
    %c0_3 = arith.constant 0 : index
    %4 = vector.load %arg4[%c0_2, %c0_3] : memref<128x384xbf16, #tpu.memory_space<vmem>>, vector<128x384xbf16>
    %c0_4 = arith.constant 0 : index
    %c0_5 = arith.constant 0 : index
    %5 = vector.load %arg5[%c0_4, %c0_5] : memref<1x256xf32, #tpu.memory_space<vmem>>, vector<1x256xf32>
    %c0_6 = arith.constant 0 : index
    %c0_7 = arith.constant 0 : index
    %6 = vector.load %arg6[%c0_6, %c0_7] : memref<1x128xf32, #tpu.memory_space<vmem>>, vector<1x128xf32>
    %c0_8 = arith.constant 0 : index
    %c0_9 = arith.constant 0 : index
    %7 = vector.load %arg7[%c0_8, %c0_9] : memref<1x128xf32, #tpu.memory_space<vmem>>, vector<1x128xf32>
    %c0_10 = arith.constant 0 : index
    %c0_11 = arith.constant 0 : index
    %8 = vector.load %arg9[%c0_10, %c0_11] : memref<8x128xf32, #tpu.memory_space<vmem>>, vector<8x128xf32>
    %c0_i32_12 = arith.constant 0 : i32
    %9 = arith.index_cast %c0_i32_12 : i32 to index
    %c0_13 = arith.constant 0 : index
    %c0_14 = arith.constant 0 : index
    %10 = vector.load %arg1[%9, %c0_13, %c0_14] : memref<8x8x128xbf16, #tpu.memory_space<vmem>>, vector<1x8x128xbf16>
    %11 = vector.shape_cast %10 : vector<1x8x128xbf16> to vector<8x128xbf16>
    %cst = arith.constant dense<0.000000e+00> : vector<8x384xf32>
    %12 = tpu.matmul %11, %3, %cst {dimension_numbers = #tpu.dot_dimension_numbers<[1], [0], [0], [1], [0, 0, 1, 1], [], []>} : vector<8x128xbf16>, vector<128x384xbf16>, vector<8x384xf32> -> vector<8x384xf32>
    %13 = arith.truncf %8 : vector<8x128xf32> to vector<8x128xbf16>
    %cst_15 = arith.constant dense<0.000000e+00> : vector<8x384xf32>
    %14 = tpu.matmul %13, %4, %cst_15 {dimension_numbers = #tpu.dot_dimension_numbers<[1], [0], [0], [1], [0, 0, 1, 1], [], []>} : vector<8x128xbf16>, vector<128x384xbf16>, vector<8x384xf32> -> vector<8x384xf32>
    %15 = vector.extract_strided_slice %12 {offsets = [0, 0], sizes = [8, 256], strides = [1, 1]} : vector<8x384xf32> to vector<8x256xf32>
    %16 = vector.extract_strided_slice %14 {offsets = [0, 0], sizes = [8, 256], strides = [1, 1]} : vector<8x384xf32> to vector<8x256xf32>
    %17 = arith.addf %15, %16 : vector<8x256xf32>
    %18 = vector.broadcast %5 : vector<1x256xf32> to vector<8x256xf32>
    %19 = arith.addf %17, %18 : vector<8x256xf32>
    %20 = arith.negf %19 : vector<8x256xf32>
    %21 = math.exp %20 : vector<8x256xf32>
    %cst_16 = arith.constant 1.000000e+00 : f32
    %22 = vector.broadcast %cst_16 : f32 to vector<8x256xf32>
    %23 = arith.addf %22, %21 : vector<8x256xf32>
    %24 = arith.divf %22, %23 : vector<8x256xf32>
    %25 = vector.extract_strided_slice %24 {offsets = [0, 0], sizes = [8, 128], strides = [1, 1]} : vector<8x256xf32> to vector<8x128xf32>
    %26 = vector.extract_strided_slice %24 {offsets = [0, 128], sizes = [8, 128], strides = [1, 1]} : vector<8x256xf32> to vector<8x128xf32>
    %27 = vector.extract_strided_slice %12 {offsets = [0, 256], sizes = [8, 128], strides = [1, 1]} : vector<8x384xf32> to vector<8x128xf32>
    %28 = vector.broadcast %6 : vector<1x128xf32> to vector<8x128xf32>
    %29 = arith.addf %27, %28 : vector<8x128xf32>
    %30 = vector.extract_strided_slice %14 {offsets = [0, 256], sizes = [8, 128], strides = [1, 1]} : vector<8x384xf32> to vector<8x128xf32>
    %31 = vector.broadcast %7 : vector<1x128xf32> to vector<8x128xf32>
    %32 = arith.addf %30, %31 : vector<8x128xf32>
    %33 = arith.mulf %25, %32 : vector<8x128xf32>
    %34 = arith.addf %29, %33 : vector<8x128xf32>
    %35 = math.tanh %34 : vector<8x128xf32>
    %cst_17 = arith.constant 1.000000e+00 : f32
    %36 = vector.broadcast %cst_17 : f32 to vector<8x128xf32>
    %37 = arith.subf %36, %26 : vector<8x128xf32>
    %38 = arith.mulf %37, %35 : vector<8x128xf32>
    %39 = arith.mulf %26, %8 : vector<8x128xf32>
    %40 = arith.addf %38, %39 : vector<8x128xf32>
    %41 = arith.truncf %40 : vector<8x128xf32> to vector<8x128xbf16>
    %42 = arith.index_cast %c0_i32_12 : i32 to index
    %c0_18 = arith.constant 0 : index
    %c0_19 = arith.constant 0 : index
    %43 = vector.load %arg8[%42, %c0_18, %c0_19] : memref<8x8x128xbf16, #tpu.memory_space<vmem>>, vector<1x8x128xbf16>
    %44 = vector.shape_cast %43 : vector<1x8x128xbf16> to vector<8x128xbf16>
    %45 = vector.shape_cast %41 : vector<8x128xbf16> to vector<1x8x128xbf16>
    tpu.vector_store %arg8[%42, %c0_18, %c0_19], %45 {strides = array<i32>} : memref<8x8x128xbf16, #tpu.memory_space<vmem>>, vector<1x8x128xbf16>,
    %c1_i32 = arith.constant 1 : i32
    %46 = arith.index_cast %c1_i32 : i32 to index
    %c0_20 = arith.constant 0 : index
    %c0_21 = arith.constant 0 : index
    %47 = vector.load %arg1[%46, %c0_20, %c0_21] : memref<8x8x128xbf16, #tpu.memory_space<vmem>>, vector<1x8x128xbf16>
    %48 = vector.shape_cast %47 : vector<1x8x128xbf16> to vector<8x128xbf16>
    %cst_22 = arith.constant dense<0.000000e+00> : vector<8x384xf32>
    %49 = tpu.matmul %48, %3, %cst_22 {dimension_numbers = #tpu.dot_dimension_numbers<[1], [0], [0], [1], [0, 0, 1, 1], [], []>} : vector<8x128xbf16>, vector<128x384xbf16>, vector<8x384xf32> -> vector<8x384xf32>
    %50 = arith.truncf %40 : vector<8x128xf32> to vector<8x128xbf16>
    %cst_23 = arith.constant dense<0.000000e+00> : vector<8x384xf32>
    %51 = tpu.matmul %50, %4, %cst_23 {dimension_numbers = #tpu.dot_dimension_numbers<[1], [0], [0], [1], [0, 0, 1, 1], [], []>} : vector<8x128xbf16>, vector<128x384xbf16>, vector<8x384xf32> -> vector<8x384xf32>
    %52 = vector.extract_strided_slice %49 {offsets = [0, 0], sizes = [8, 256], strides = [1, 1]} : vector<8x384xf32> to vector<8x256xf32>
    %53 = vector.extract_strided_slice %51 {offsets = [0, 0], sizes = [8, 256], strides = [1, 1]} : vector<8x384xf32> to vector<8x256xf32>
    %54 = arith.addf %52, %53 : vector<8x256xf32>
    %55 = vector.broadcast %5 : vector<1x256xf32> to vector<8x256xf32>
    %56 = arith.addf %54, %55 : vector<8x256xf32>
    %57 = arith.negf %56 : vector<8x256xf32>
    %58 = math.exp %57 : vector<8x256xf32>
    %cst_24 = arith.constant 1.000000e+00 : f32
    %59 = vector.broadcast %cst_24 : f32 to vector<8x256xf32>
    %60 = arith.addf %59, %58 : vector<8x256xf32>
    %61 = arith.divf %59, %60 : vector<8x256xf32>
    %62 = vector.extract_strided_slice %61 {offsets = [0, 0], sizes = [8, 128], strides = [1, 1]} : vector<8x256xf32> to vector<8x128xf32>
    %63 = vector.extract_strided_slice %61 {offsets = [0, 128], sizes = [8, 128], strides = [1, 1]} : vector<8x256xf32> to vector<8x128xf32>
    %64 = vector.extract_strided_slice %49 {offsets = [0, 256], sizes = [8, 128], strides = [1, 1]} : vector<8x384xf32> to vector<8x128xf32>
    %65 = vector.broadcast %6 : vector<1x128xf32> to vector<8x128xf32>
    %66 = arith.addf %64, %65 : vector<8x128xf32>
    %67 = vector.extract_strided_slice %51 {offsets = [0, 256], sizes = [8, 128], strides = [1, 1]} : vector<8x384xf32> to vector<8x128xf32>
    %68 = vector.broadcast %7 : vector<1x128xf32> to vector<8x128xf32>
    %69 = arith.addf %67, %68 : vector<8x128xf32>
    %70 = arith.mulf %62, %69 : vector<8x128xf32>
    %71 = arith.addf %66, %70 : vector<8x128xf32>
    %72 = math.tanh %71 : vector<8x128xf32>
    %cst_25 = arith.constant 1.000000e+00 : f32
    %73 = vector.broadcast %cst_25 : f32 to vector<8x128xf32>
    %74 = arith.subf %73, %63 : vector<8x128xf32>
    %75 = arith.mulf %74, %72 : vector<8x128xf32>
    %76 = arith.mulf %63, %40 : vector<8x128xf32>
    %77 = arith.addf %75, %76 : vector<8x128xf32>
    %78 = arith.truncf %77 : vector<8x128xf32> to vector<8x128xbf16>
    %79 = arith.index_cast %c1_i32 : i32 to index
    %c0_26 = arith.constant 0 : index
    %c0_27 = arith.constant 0 : index
    %80 = vector.load %arg8[%79, %c0_26, %c0_27] : memref<8x8x128xbf16, #tpu.memory_space<vmem>>, vector<1x8x128xbf16>
    %81 = vector.shape_cast %80 : vector<1x8x128xbf16> to vector<8x128xbf16>
    %82 = vector.shape_cast %78 : vector<8x128xbf16> to vector<1x8x128xbf16>
    tpu.vector_store %arg8[%79, %c0_26, %c0_27], %82 {strides = array<i32>} : memref<8x8x128xbf16, #tpu.memory_space<vmem>>, vector<1x8x128xbf16>,
    %c2_i32 = arith.constant 2 : i32
    %83 = arith.index_cast %c2_i32 : i32 to index
    %c0_28 = arith.constant 0 : index
    %c0_29 = arith.constant 0 : index
    %84 = vector.load %arg1[%83, %c0_28, %c0_29] : memref<8x8x128xbf16, #tpu.memory_space<vmem>>, vector<1x8x128xbf16>
    %85 = vector.shape_cast %84 : vector<1x8x128xbf16> to vector<8x128xbf16>
    %cst_30 = arith.constant dense<0.000000e+00> : vector<8x384xf32>
    %86 = tpu.matmul %85, %3, %cst_30 {dimension_numbers = #tpu.dot_dimension_numbers<[1], [0], [0], [1], [0, 0, 1, 1], [], []>} : vector<8x128xbf16>, vector<128x384xbf16>, vector<8x384xf32> -> vector<8x384xf32>
    %87 = arith.truncf %77 : vector<8x128xf32> to vector<8x128xbf16>
    %cst_31 = arith.constant dense<0.000000e+00> : vector<8x384xf32>
    %88 = tpu.matmul %87, %4, %cst_31 {dimension_numbers = #tpu.dot_dimension_numbers<[1], [0], [0], [1], [0, 0, 1, 1], [], []>} : vector<8x128xbf16>, vector<128x384xbf16>, vector<8x384xf32> -> vector<8x384xf32>
    %89 = vector.extract_strided_slice %86 {offsets = [0, 0], sizes = [8, 256], strides = [1, 1]} : vector<8x384xf32> to vector<8x256xf32>
    %90 = vector.extract_strided_slice %88 {offsets = [0, 0], sizes = [8, 256], strides = [1, 1]} : vector<8x384xf32> to vector<8x256xf32>
    %91 = arith.addf %89, %90 : vector<8x256xf32>
    %92 = vector.broadcast %5 : vector<1x256xf32> to vector<8x256xf32>
    %93 = arith.addf %91, %92 : vector<8x256xf32>
    %94 = arith.negf %93 : vector<8x256xf32>
    %95 = math.exp %94 : vector<8x256xf32>
    %cst_32 = arith.constant 1.000000e+00 : f32
    %96 = vector.broadcast %cst_32 : f32 to vector<8x256xf32>
    %97 = arith.addf %96, %95 : vector<8x256xf32>
    %98 = arith.divf %96, %97 : vector<8x256xf32>
    %99 = vector.extract_strided_slice %98 {offsets = [0, 0], sizes = [8, 128], strides = [1, 1]} : vector<8x256xf32> to vector<8x128xf32>
    %100 = vector.extract_strided_slice %98 {offsets = [0, 128], sizes = [8, 128], strides = [1, 1]} : vector<8x256xf32> to vector<8x128xf32>
    %101 = vector.extract_strided_slice %86 {offsets = [0, 256], sizes = [8, 128], strides = [1, 1]} : vector<8x384xf32> to vector<8x128xf32>
    %102 = vector.broadcast %6 : vector<1x128xf32> to vector<8x128xf32>
    %103 = arith.addf %101, %102 : vector<8x128xf32>
    %104 = vector.extract_strided_slice %88 {offsets = [0, 256], sizes = [8, 128], strides = [1, 1]} : vector<8x384xf32> to vector<8x128xf32>
    %105 = vector.broadcast %7 : vector<1x128xf32> to vector<8x128xf32>
    %106 = arith.addf %104, %105 : vector<8x128xf32>
    %107 = arith.mulf %99, %106 : vector<8x128xf32>
    %108 = arith.addf %103, %107 : vector<8x128xf32>
    %109 = math.tanh %108 : vector<8x128xf32>
    %cst_33 = arith.constant 1.000000e+00 : f32
    %110 = vector.broadcast %cst_33 : f32 to vector<8x128xf32>
    %111 = arith.subf %110, %100 : vector<8x128xf32>
    %112 = arith.mulf %111, %109 : vector<8x128xf32>
    %113 = arith.mulf %100, %77 : vector<8x128xf32>
    %114 = arith.addf %112, %113 : vector<8x128xf32>
    %115 = arith.truncf %114 : vector<8x128xf32> to vector<8x128xbf16>
    %116 = arith.index_cast %c2_i32 : i32 to index
    %c0_34 = arith.constant 0 : index
    %c0_35 = arith.constant 0 : index
    %117 = vector.load %arg8[%116, %c0_34, %c0_35] : memref<8x8x128xbf16, #tpu.memory_space<vmem>>, vector<1x8x128xbf16>
    %118 = vector.shape_cast %117 : vector<1x8x128xbf16> to vector<8x128xbf16>
    %119 = vector.shape_cast %115 : vector<8x128xbf16> to vector<1x8x128xbf16>
    tpu.vector_store %arg8[%116, %c0_34, %c0_35], %119 {strides = array<i32>} : memref<8x8x128xbf16, #tpu.memory_space<vmem>>, vector<1x8x128xbf16>,
    %c3_i32 = arith.constant 3 : i32
    %120 = arith.index_cast %c3_i32 : i32 to index
    %c0_36 = arith.constant 0 : index
    %c0_37 = arith.constant 0 : index
    %121 = vector.load %arg1[%120, %c0_36, %c0_37] : memref<8x8x128xbf16, #tpu.memory_space<vmem>>, vector<1x8x128xbf16>
    %122 = vector.shape_cast %121 : vector<1x8x128xbf16> to vector<8x128xbf16>
    %cst_38 = arith.constant dense<0.000000e+00> : vector<8x384xf32>
    %123 = tpu.matmul %122, %3, %cst_38 {dimension_numbers = #tpu.dot_dimension_numbers<[1], [0], [0], [1], [0, 0, 1, 1], [], []>} : vector<8x128xbf16>, vector<128x384xbf16>, vector<8x384xf32> -> vector<8x384xf32>
    %124 = arith.truncf %114 : vector<8x128xf32> to vector<8x128xbf16>
    %cst_39 = arith.constant dense<0.000000e+00> : vector<8x384xf32>
    %125 = tpu.matmul %124, %4, %cst_39 {dimension_numbers = #tpu.dot_dimension_numbers<[1], [0], [0], [1], [0, 0, 1, 1], [], []>} : vector<8x128xbf16>, vector<128x384xbf16>, vector<8x384xf32> -> vector<8x384xf32>
    %126 = vector.extract_strided_slice %123 {offsets = [0, 0], sizes = [8, 256], strides = [1, 1]} : vector<8x384xf32> to vector<8x256xf32>
    %127 = vector.extract_strided_slice %125 {offsets = [0, 0], sizes = [8, 256], strides = [1, 1]} : vector<8x384xf32> to vector<8x256xf32>
    %128 = arith.addf %126, %127 : vector<8x256xf32>
    %129 = vector.broadcast %5 : vector<1x256xf32> to vector<8x256xf32>
    %130 = arith.addf %128, %129 : vector<8x256xf32>
    %131 = arith.negf %130 : vector<8x256xf32>
    %132 = math.exp %131 : vector<8x256xf32>
    %cst_40 = arith.constant 1.000000e+00 : f32
    %133 = vector.broadcast %cst_40 : f32 to vector<8x256xf32>
    %134 = arith.addf %133, %132 : vector<8x256xf32>
    %135 = arith.divf %133, %134 : vector<8x256xf32>
    %136 = vector.extract_strided_slice %135 {offsets = [0, 0], sizes = [8, 128], strides = [1, 1]} : vector<8x256xf32> to vector<8x128xf32>
    %137 = vector.extract_strided_slice %135 {offsets = [0, 128], sizes = [8, 128], strides = [1, 1]} : vector<8x256xf32> to vector<8x128xf32>
    %138 = vector.extract_strided_slice %123 {offsets = [0, 256], sizes = [8, 128], strides = [1, 1]} : vector<8x384xf32> to vector<8x128xf32>
    %139 = vector.broadcast %6 : vector<1x128xf32> to vector<8x128xf32>
    %140 = arith.addf %138, %139 : vector<8x128xf32>
    %141 = vector.extract_strided_slice %125 {offsets = [0, 256], sizes = [8, 128], strides = [1, 1]} : vector<8x384xf32> to vector<8x128xf32>
    %142 = vector.broadcast %7 : vector<1x128xf32> to vector<8x128xf32>
    %143 = arith.addf %141, %142 : vector<8x128xf32>
    %144 = arith.mulf %136, %143 : vector<8x128xf32>
    %145 = arith.addf %140, %144 : vector<8x128xf32>
    %146 = math.tanh %145 : vector<8x128xf32>
    %cst_41 = arith.constant 1.000000e+00 : f32
    %147 = vector.broadcast %cst_41 : f32 to vector<8x128xf32>
    %148 = arith.subf %147, %137 : vector<8x128xf32>
    %149 = arith.mulf %148, %146 : vector<8x128xf32>
    %150 = arith.mulf %137, %114 : vector<8x128xf32>
    %151 = arith.addf %149, %150 : vector<8x128xf32>
    %152 = arith.truncf %151 : vector<8x128xf32> to vector<8x128xbf16>
    %153 = arith.index_cast %c3_i32 : i32 to index
    %c0_42 = arith.constant 0 : index
    %c0_43 = arith.constant 0 : index
    %154 = vector.load %arg8[%153, %c0_42, %c0_43] : memref<8x8x128xbf16, #tpu.memory_space<vmem>>, vector<1x8x128xbf16>
    %155 = vector.shape_cast %154 : vector<1x8x128xbf16> to vector<8x128xbf16>
    %156 = vector.shape_cast %152 : vector<8x128xbf16> to vector<1x8x128xbf16>
    tpu.vector_store %arg8[%153, %c0_42, %c0_43], %156 {strides = array<i32>} : memref<8x8x128xbf16, #tpu.memory_space<vmem>>, vector<1x8x128xbf16>,
    %c4_i32 = arith.constant 4 : i32
    %157 = arith.index_cast %c4_i32 : i32 to index
    %c0_44 = arith.constant 0 : index
    %c0_45 = arith.constant 0 : index
    %158 = vector.load %arg1[%157, %c0_44, %c0_45] : memref<8x8x128xbf16, #tpu.memory_space<vmem>>, vector<1x8x128xbf16>
    %159 = vector.shape_cast %158 : vector<1x8x128xbf16> to vector<8x128xbf16>
    %cst_46 = arith.constant dense<0.000000e+00> : vector<8x384xf32>
    %160 = tpu.matmul %159, %3, %cst_46 {dimension_numbers = #tpu.dot_dimension_numbers<[1], [0], [0], [1], [0, 0, 1, 1], [], []>} : vector<8x128xbf16>, vector<128x384xbf16>, vector<8x384xf32> -> vector<8x384xf32>
    %161 = arith.truncf %151 : vector<8x128xf32> to vector<8x128xbf16>
    %cst_47 = arith.constant dense<0.000000e+00> : vector<8x384xf32>
    %162 = tpu.matmul %161, %4, %cst_47 {dimension_numbers = #tpu.dot_dimension_numbers<[1], [0], [0], [1], [0, 0, 1, 1], [], []>} : vector<8x128xbf16>, vector<128x384xbf16>, vector<8x384xf32> -> vector<8x384xf32>
    %163 = vector.extract_strided_slice %160 {offsets = [0, 0], sizes = [8, 256], strides = [1, 1]} : vector<8x384xf32> to vector<8x256xf32>
    %164 = vector.extract_strided_slice %162 {offsets = [0, 0], sizes = [8, 256], strides = [1, 1]} : vector<8x384xf32> to vector<8x256xf32>
    %165 = arith.addf %163, %164 : vector<8x256xf32>
    %166 = vector.broadcast %5 : vector<1x256xf32> to vector<8x256xf32>
    %167 = arith.addf %165, %166 : vector<8x256xf32>
    %168 = arith.negf %167 : vector<8x256xf32>
    %169 = math.exp %168 : vector<8x256xf32>
    %cst_48 = arith.constant 1.000000e+00 : f32
    %170 = vector.broadcast %cst_48 : f32 to vector<8x256xf32>
    %171 = arith.addf %170, %169 : vector<8x256xf32>
    %172 = arith.divf %170, %171 : vector<8x256xf32>
    %173 = vector.extract_strided_slice %172 {offsets = [0, 0], sizes = [8, 128], strides = [1, 1]} : vector<8x256xf32> to vector<8x128xf32>
    %174 = vector.extract_strided_slice %172 {offsets = [0, 128], sizes = [8, 128], strides = [1, 1]} : vector<8x256xf32> to vector<8x128xf32>
    %175 = vector.extract_strided_slice %160 {offsets = [0, 256], sizes = [8, 128], strides = [1, 1]} : vector<8x384xf32> to vector<8x128xf32>
    %176 = vector.broadcast %6 : vector<1x128xf32> to vector<8x128xf32>
    %177 = arith.addf %175, %176 : vector<8x128xf32>
    %178 = vector.extract_strided_slice %162 {offsets = [0, 256], sizes = [8, 128], strides = [1, 1]} : vector<8x384xf32> to vector<8x128xf32>
    %179 = vector.broadcast %7 : vector<1x128xf32> to vector<8x128xf32>
    %180 = arith.addf %178, %179 : vector<8x128xf32>
    %181 = arith.mulf %173, %180 : vector<8x128xf32>
    %182 = arith.addf %177, %181 : vector<8x128xf32>
    %183 = math.tanh %182 : vector<8x128xf32>
    %cst_49 = arith.constant 1.000000e+00 : f32
    %184 = vector.broadcast %cst_49 : f32 to vector<8x128xf32>
    %185 = arith.subf %184, %174 : vector<8x128xf32>
    %186 = arith.mulf %185, %183 : vector<8x128xf32>
    %187 = arith.mulf %174, %151 : vector<8x128xf32>
    %188 = arith.addf %186, %187 : vector<8x128xf32>
    %189 = arith.truncf %188 : vector<8x128xf32> to vector<8x128xbf16>
    %190 = arith.index_cast %c4_i32 : i32 to index
    %c0_50 = arith.constant 0 : index
    %c0_51 = arith.constant 0 : index
    %191 = vector.load %arg8[%190, %c0_50, %c0_51] : memref<8x8x128xbf16, #tpu.memory_space<vmem>>, vector<1x8x128xbf16>
    %192 = vector.shape_cast %191 : vector<1x8x128xbf16> to vector<8x128xbf16>
    %193 = vector.shape_cast %189 : vector<8x128xbf16> to vector<1x8x128xbf16>
    tpu.vector_store %arg8[%190, %c0_50, %c0_51], %193 {strides = array<i32>} : memref<8x8x128xbf16, #tpu.memory_space<vmem>>, vector<1x8x128xbf16>,
    %c5_i32 = arith.constant 5 : i32
    %194 = arith.index_cast %c5_i32 : i32 to index
    %c0_52 = arith.constant 0 : index
    %c0_53 = arith.constant 0 : index
    %195 = vector.load %arg1[%194, %c0_52, %c0_53] : memref<8x8x128xbf16, #tpu.memory_space<vmem>>, vector<1x8x128xbf16>
    %196 = vector.shape_cast %195 : vector<1x8x128xbf16> to vector<8x128xbf16>
    %cst_54 = arith.constant dense<0.000000e+00> : vector<8x384xf32>
    %197 = tpu.matmul %196, %3, %cst_54 {dimension_numbers = #tpu.dot_dimension_numbers<[1], [0], [0], [1], [0, 0, 1, 1], [], []>} : vector<8x128xbf16>, vector<128x384xbf16>, vector<8x384xf32> -> vector<8x384xf32>
    %198 = arith.truncf %188 : vector<8x128xf32> to vector<8x128xbf16>
    %cst_55 = arith.constant dense<0.000000e+00> : vector<8x384xf32>
    %199 = tpu.matmul %198, %4, %cst_55 {dimension_numbers = #tpu.dot_dimension_numbers<[1], [0], [0], [1], [0, 0, 1, 1], [], []>} : vector<8x128xbf16>, vector<128x384xbf16>, vector<8x384xf32> -> vector<8x384xf32>
    %200 = vector.extract_strided_slice %197 {offsets = [0, 0], sizes = [8, 256], strides = [1, 1]} : vector<8x384xf32> to vector<8x256xf32>
    %201 = vector.extract_strided_slice %199 {offsets = [0, 0], sizes = [8, 256], strides = [1, 1]} : vector<8x384xf32> to vector<8x256xf32>
    %202 = arith.addf %200, %201 : vector<8x256xf32>
    %203 = vector.broadcast %5 : vector<1x256xf32> to vector<8x256xf32>
    %204 = arith.addf %202, %203 : vector<8x256xf32>
    %205 = arith.negf %204 : vector<8x256xf32>
    %206 = math.exp %205 : vector<8x256xf32>
    %cst_56 = arith.constant 1.000000e+00 : f32
    %207 = vector.broadcast %cst_56 : f32 to vector<8x256xf32>
    %208 = arith.addf %207, %206 : vector<8x256xf32>
    %209 = arith.divf %207, %208 : vector<8x256xf32>
    %210 = vector.extract_strided_slice %209 {offsets = [0, 0], sizes = [8, 128], strides = [1, 1]} : vector<8x256xf32> to vector<8x128xf32>
    %211 = vector.extract_strided_slice %209 {offsets = [0, 128], sizes = [8, 128], strides = [1, 1]} : vector<8x256xf32> to vector<8x128xf32>
    %212 = vector.extract_strided_slice %197 {offsets = [0, 256], sizes = [8, 128], strides = [1, 1]} : vector<8x384xf32> to vector<8x128xf32>
    %213 = vector.broadcast %6 : vector<1x128xf32> to vector<8x128xf32>
    %214 = arith.addf %212, %213 : vector<8x128xf32>
    %215 = vector.extract_strided_slice %199 {offsets = [0, 256], sizes = [8, 128], strides = [1, 1]} : vector<8x384xf32> to vector<8x128xf32>
    %216 = vector.broadcast %7 : vector<1x128xf32> to vector<8x128xf32>
    %217 = arith.addf %215, %216 : vector<8x128xf32>
    %218 = arith.mulf %210, %217 : vector<8x128xf32>
    %219 = arith.addf %214, %218 : vector<8x128xf32>
    %220 = math.tanh %219 : vector<8x128xf32>
    %cst_57 = arith.constant 1.000000e+00 : f32
    %221 = vector.broadcast %cst_57 : f32 to vector<8x128xf32>
    %222 = arith.subf %221, %211 : vector<8x128xf32>
    %223 = arith.mulf %222, %220 : vector<8x128xf32>
    %224 = arith.mulf %211, %188 : vector<8x128xf32>
    %225 = arith.addf %223, %224 : vector<8x128xf32>
    %226 = arith.truncf %225 : vector<8x128xf32> to vector<8x128xbf16>
    %227 = arith.index_cast %c5_i32 : i32 to index
    %c0_58 = arith.constant 0 : index
    %c0_59 = arith.constant 0 : index
    %228 = vector.load %arg8[%227, %c0_58, %c0_59] : memref<8x8x128xbf16, #tpu.memory_space<vmem>>, vector<1x8x128xbf16>
    %229 = vector.shape_cast %228 : vector<1x8x128xbf16> to vector<8x128xbf16>
    %230 = vector.shape_cast %226 : vector<8x128xbf16> to vector<1x8x128xbf16>
    tpu.vector_store %arg8[%227, %c0_58, %c0_59], %230 {strides = array<i32>} : memref<8x8x128xbf16, #tpu.memory_space<vmem>>, vector<1x8x128xbf16>,
    %c6_i32 = arith.constant 6 : i32
    %231 = arith.index_cast %c6_i32 : i32 to index
    %c0_60 = arith.constant 0 : index
    %c0_61 = arith.constant 0 : index
    %232 = vector.load %arg1[%231, %c0_60, %c0_61] : memref<8x8x128xbf16, #tpu.memory_space<vmem>>, vector<1x8x128xbf16>
    %233 = vector.shape_cast %232 : vector<1x8x128xbf16> to vector<8x128xbf16>
    %cst_62 = arith.constant dense<0.000000e+00> : vector<8x384xf32>
    %234 = tpu.matmul %233, %3, %cst_62 {dimension_numbers = #tpu.dot_dimension_numbers<[1], [0], [0], [1], [0, 0, 1, 1], [], []>} : vector<8x128xbf16>, vector<128x384xbf16>, vector<8x384xf32> -> vector<8x384xf32>
    %235 = arith.truncf %225 : vector<8x128xf32> to vector<8x128xbf16>
    %cst_63 = arith.constant dense<0.000000e+00> : vector<8x384xf32>
    %236 = tpu.matmul %235, %4, %cst_63 {dimension_numbers = #tpu.dot_dimension_numbers<[1], [0], [0], [1], [0, 0, 1, 1], [], []>} : vector<8x128xbf16>, vector<128x384xbf16>, vector<8x384xf32> -> vector<8x384xf32>
    %237 = vector.extract_strided_slice %234 {offsets = [0, 0], sizes = [8, 256], strides = [1, 1]} : vector<8x384xf32> to vector<8x256xf32>
    %238 = vector.extract_strided_slice %236 {offsets = [0, 0], sizes = [8, 256], strides = [1, 1]} : vector<8x384xf32> to vector<8x256xf32>
    %239 = arith.addf %237, %238 : vector<8x256xf32>
    %240 = vector.broadcast %5 : vector<1x256xf32> to vector<8x256xf32>
    %241 = arith.addf %239, %240 : vector<8x256xf32>
    %242 = arith.negf %241 : vector<8x256xf32>
    %243 = math.exp %242 : vector<8x256xf32>
    %cst_64 = arith.constant 1.000000e+00 : f32
    %244 = vector.broadcast %cst_64 : f32 to vector<8x256xf32>
    %245 = arith.addf %244, %243 : vector<8x256xf32>
    %246 = arith.divf %244, %245 : vector<8x256xf32>
    %247 = vector.extract_strided_slice %246 {offsets = [0, 0], sizes = [8, 128], strides = [1, 1]} : vector<8x256xf32> to vector<8x128xf32>
    %248 = vector.extract_strided_slice %246 {offsets = [0, 128], sizes = [8, 128], strides = [1, 1]} : vector<8x256xf32> to vector<8x128xf32>
    %249 = vector.extract_strided_slice %234 {offsets = [0, 256], sizes = [8, 128], strides = [1, 1]} : vector<8x384xf32> to vector<8x128xf32>
    %250 = vector.broadcast %6 : vector<1x128xf32> to vector<8x128xf32>
    %251 = arith.addf %249, %250 : vector<8x128xf32>
    %252 = vector.extract_strided_slice %236 {offsets = [0, 256], sizes = [8, 128], strides = [1, 1]} : vector<8x384xf32> to vector<8x128xf32>
    %253 = vector.broadcast %7 : vector<1x128xf32> to vector<8x128xf32>
    %254 = arith.addf %252, %253 : vector<8x128xf32>
    %255 = arith.mulf %247, %254 : vector<8x128xf32>
    %256 = arith.addf %251, %255 : vector<8x128xf32>
    %257 = math.tanh %256 : vector<8x128xf32>
    %cst_65 = arith.constant 1.000000e+00 : f32
    %258 = vector.broadcast %cst_65 : f32 to vector<8x128xf32>
    %259 = arith.subf %258, %248 : vector<8x128xf32>
    %260 = arith.mulf %259, %257 : vector<8x128xf32>
    %261 = arith.mulf %248, %225 : vector<8x128xf32>
    %262 = arith.addf %260, %261 : vector<8x128xf32>
    %263 = arith.truncf %262 : vector<8x128xf32> to vector<8x128xbf16>
    %264 = arith.index_cast %c6_i32 : i32 to index
    %c0_66 = arith.constant 0 : index
    %c0_67 = arith.constant 0 : index
    %265 = vector.load %arg8[%264, %c0_66, %c0_67] : memref<8x8x128xbf16, #tpu.memory_space<vmem>>, vector<1x8x128xbf16>
    %266 = vector.shape_cast %265 : vector<1x8x128xbf16> to vector<8x128xbf16>
    %267 = vector.shape_cast %263 : vector<8x128xbf16> to vector<1x8x128xbf16>
    tpu.vector_store %arg8[%264, %c0_66, %c0_67], %267 {strides = array<i32>} : memref<8x8x128xbf16, #tpu.memory_space<vmem>>, vector<1x8x128xbf16>,
    %c7_i32 = arith.constant 7 : i32
    %268 = arith.index_cast %c7_i32 : i32 to index
    %c0_68 = arith.constant 0 : index
    %c0_69 = arith.constant 0 : index
    %269 = vector.load %arg1[%268, %c0_68, %c0_69] : memref<8x8x128xbf16, #tpu.memory_space<vmem>>, vector<1x8x128xbf16>
    %270 = vector.shape_cast %269 : vector<1x8x128xbf16> to vector<8x128xbf16>
    %cst_70 = arith.constant dense<0.000000e+00> : vector<8x384xf32>
    %271 = tpu.matmul %270, %3, %cst_70 {dimension_numbers = #tpu.dot_dimension_numbers<[1], [0], [0], [1], [0, 0, 1, 1], [], []>} : vector<8x128xbf16>, vector<128x384xbf16>, vector<8x384xf32> -> vector<8x384xf32>
    %272 = arith.truncf %262 : vector<8x128xf32> to vector<8x128xbf16>
    %cst_71 = arith.constant dense<0.000000e+00> : vector<8x384xf32>
    %273 = tpu.matmul %272, %4, %cst_71 {dimension_numbers = #tpu.dot_dimension_numbers<[1], [0], [0], [1], [0, 0, 1, 1], [], []>} : vector<8x128xbf16>, vector<128x384xbf16>, vector<8x384xf32> -> vector<8x384xf32>
    %274 = vector.extract_strided_slice %271 {offsets = [0, 0], sizes = [8, 256], strides = [1, 1]} : vector<8x384xf32> to vector<8x256xf32>
    %275 = vector.extract_strided_slice %273 {offsets = [0, 0], sizes = [8, 256], strides = [1, 1]} : vector<8x384xf32> to vector<8x256xf32>
    %276 = arith.addf %274, %275 : vector<8x256xf32>
    %277 = vector.broadcast %5 : vector<1x256xf32> to vector<8x256xf32>
    %278 = arith.addf %276, %277 : vector<8x256xf32>
    %279 = arith.negf %278 : vector<8x256xf32>
    %280 = math.exp %279 : vector<8x256xf32>
    %cst_72 = arith.constant 1.000000e+00 : f32
    %281 = vector.broadcast %cst_72 : f32 to vector<8x256xf32>
    %282 = arith.addf %281, %280 : vector<8x256xf32>
    %283 = arith.divf %281, %282 : vector<8x256xf32>
    %284 = vector.extract_strided_slice %283 {offsets = [0, 0], sizes = [8, 128], strides = [1, 1]} : vector<8x256xf32> to vector<8x128xf32>
    %285 = vector.extract_strided_slice %283 {offsets = [0, 128], sizes = [8, 128], strides = [1, 1]} : vector<8x256xf32> to vector<8x128xf32>
    %286 = vector.extract_strided_slice %271 {offsets = [0, 256], sizes = [8, 128], strides = [1, 1]} : vector<8x384xf32> to vector<8x128xf32>
    %287 = vector.broadcast %6 : vector<1x128xf32> to vector<8x128xf32>
    %288 = arith.addf %286, %287 : vector<8x128xf32>
    %289 = vector.extract_strided_slice %273 {offsets = [0, 256], sizes = [8, 128], strides = [1, 1]} : vector<8x384xf32> to vector<8x128xf32>
    %290 = vector.broadcast %7 : vector<1x128xf32> to vector<8x128xf32>
    %291 = arith.addf %289, %290 : vector<8x128xf32>
    %292 = arith.mulf %284, %291 : vector<8x128xf32>
    %293 = arith.addf %288, %292 : vector<8x128xf32>
    %294 = math.tanh %293 : vector<8x128xf32>
    %cst_73 = arith.constant 1.000000e+00 : f32
    %295 = vector.broadcast %cst_73 : f32 to vector<8x128xf32>
    %296 = arith.subf %295, %285 : vector<8x128xf32>
    %297 = arith.mulf %296, %294 : vector<8x128xf32>
    %298 = arith.mulf %285, %262 : vector<8x128xf32>
    %299 = arith.addf %297, %298 : vector<8x128xf32>
    %300 = arith.truncf %299 : vector<8x128xf32> to vector<8x128xbf16>
    %301 = arith.index_cast %c7_i32 : i32 to index
    %c0_74 = arith.constant 0 : index
    %c0_75 = arith.constant 0 : index
    %302 = vector.load %arg8[%301, %c0_74, %c0_75] : memref<8x8x128xbf16, #tpu.memory_space<vmem>>, vector<1x8x128xbf16>
    %303 = vector.shape_cast %302 : vector<1x8x128xbf16> to vector<8x128xbf16>
    %304 = vector.shape_cast %300 : vector<8x128xbf16> to vector<1x8x128xbf16>
    tpu.vector_store %arg8[%301, %c0_74, %c0_75], %304 {strides = array<i32>} : memref<8x8x128xbf16, #tpu.memory_space<vmem>>, vector<1x8x128xbf16>,
    %c8_i32 = arith.constant 8 : i32
    %c0_76 = arith.constant 0 : index
    %c0_77 = arith.constant 0 : index
    %305 = vector.load %arg9[%c0_76, %c0_77] : memref<8x128xf32, #tpu.memory_space<vmem>>, vector<8x128xf32>
    tpu.vector_store %arg9[%c0_76, %c0_77], %299 {strides = array<i32>} : memref<8x128xf32, #tpu.memory_space<vmem>>, vector<8x128xf32>,
    return
  }
  func.func @transform_0(%arg0: i32) -> (i32, i32, i32) {
    %c0_i32 = arith.constant 0 : i32
    %c0_i32_0 = arith.constant 0 : i32
    %c0_i32_1 = arith.constant 0 : i32
    return %arg0, %c0_i32, %c0_i32_0 : i32, i32, i32
  }
  func.func @transform_1(%arg0: i32) -> (i32, i32) {
    %c0_i32 = arith.constant 0 : i32
    %c0_i32_0 = arith.constant 0 : i32
    %c0_i32_1 = arith.constant 0 : i32
    return %c0_i32, %c0_i32_0 : i32, i32
  }
  func.func @transform_2(%arg0: i32) -> (i32, i32) {
    %c0_i32 = arith.constant 0 : i32
    %c0_i32_0 = arith.constant 0 : i32
    %c0_i32_1 = arith.constant 0 : i32
    return %c0_i32, %c0_i32_0 : i32, i32
  }
  func.func @transform_3(%arg0: i32) -> (i32, i32) {
    %c0_i32 = arith.constant 0 : i32
    %c0_i32_0 = arith.constant 0 : i32
    %c0_i32_1 = arith.constant 0 : i32
    return %c0_i32, %c0_i32_0 : i32, i32
  }
  func.func @transform_4(%arg0: i32) -> (i32, i32) {
    %c0_i32 = arith.constant 0 : i32
    %c0_i32_0 = arith.constant 0 : i32
    %c0_i32_1 = arith.constant 0 : i32
    return %c0_i32, %c0_i32_0 : i32, i32
  }
  func.func @transform_5(%arg0: i32) -> (i32, i32) {
    %c0_i32 = arith.constant 0 : i32
    %c0_i32_0 = arith.constant 0 : i32
    %c0_i32_1 = arith.constant 0 : i32
    return %c0_i32, %c0_i32_0 : i32, i32
  }
  func.func @transform_6(%arg0: i32) -> (i32, i32) {
    %c0_i32 = arith.constant 0 : i32
    %c0_i32_0 = arith.constant 0 : i32
    %c0_i32_1 = arith.constant 0 : i32
    return %c0_i32, %c0_i32_0 : i32, i32
  }
  func.func @transform_7(%arg0: i32) -> (i32, i32, i32) {
    %c0_i32 = arith.constant 0 : i32
    %c0_i32_0 = arith.constant 0 : i32
    %c0_i32_1 = arith.constant 0 : i32
    return %arg0, %c0_i32, %c0_i32_0 : i32, i32, i32
  }
}

</mosaic_0001>

<bundles_post_ra>
// kernel: tpu_custom_call.1
= control target key start
LH: loop header
LB: loop body
LE: loop exit
PB: predicated region body
PF: predicated region fallthrough
CT: control target
= control target key end

     0   :  { %12 = vsyncpa [#allocation4], 0  ;;  %s3776_s0 = inlined_call_operand.hbm [shape: bf16[8,8,128], index: 0, kind: input, shape index: {}]   ;;  %s3777_s1 = inlined_call_operand.hbm [shape: f32[8,128], index: 1, kind: input, shape index: {}]   ;;  %s3778_s2 = inlined_call_operand.hbm [shape: bf16[128,384], index: 2, kind: input, shape index: {}]   ;;  %s3779_s3 = inlined_call_operand.hbm [shape: bf16[128,384], index: 3, kind: input, shape index: {}]   ;;  %s3780_s4 = inlined_call_operand.vmem [shape: f32[1,256], index: 4, kind: input, shape index: {}]   ;;  %s3781_s5 = inlined_call_operand.vmem [shape: f32[1,128], index: 5, kind: input, shape index: {}]   ;;  %s3782_s6 = inlined_call_operand.vmem [shape: f32[1,128], index: 6, kind: input, shape index: {}]   ;;  %s3783_s7 = inlined_call_operand.hbm [shape: bf16[8,8,128], index: 7, kind: output, shape index: {}]  }
   0x1   :  { %13 = vsyncpa [#allocation7], 0 }
   0x2   :  { %14 = vsyncpa [#allocation10], 0 }
   0x3   :  { %15 = vsyncpa [#allocation5], 0  ;;  %s2833_s24 = smov [#allocation6]   ;;  %s2834_s26 = smov [#allocation3]  }
   0x4   :  { %s34_s25 = sshll.u32 %s2833_s24, 4  ;;  %s21_s27 = sshll.u32 %s2834_s26, 4  ;;  %s35_s25 = int_to_ptr.vmem [resolvable:$true] %s34_s25  ;;  %s22_s27 = int_to_ptr.vmem [resolvable:$true] %s21_s27 }
   0x5   :  { %s2733_s28 = scalar_lea.vmem %s35_s25, 128  ;;  %p2738_p1 = scmp.lt.s32.totalorder %s35_s25, %s35_s25 }
   0x6   :  { %p2734_p0 = scmp.ne.s32.totalorder %s35_s25, %s2733_s28  ;;  %p2739_p2 = scmp.lt.s32.totalorder %s2733_s28, %s2733_s28 }
   0x8   :  { %p2740_p3 = por %p2739_p2, %p2738_p1 }
   0xa   :  { %p2741_p4 = pnand %p2740_p3, %p2734_p0 }
   0xc   :  { %2744 = shalt.err (!%p2741_p4)
}
   0xd   :  { %37 = dma.hbm_to_vmem [thread:$0]  %s3777_s1, 128, %s35_s25, [#allocation7]  }
   0xe   :  { %s2753_s8 = scalar_lea.vmem %s22_s27, 512  ;;  %p2758_p6 = scmp.lt.s32.totalorder %s22_s27, %s22_s27 }
   0xf   :  { %p2754_p5 = scmp.ne.s32.totalorder %s22_s27, %s2753_s8  ;;  %p2759_p7 = scmp.lt.s32.totalorder %s2753_s8, %s2753_s8 }
  0x11   :  { %p2760_p8 = por %p2759_p7, %p2758_p6 }
  0x13   :  { %p2761_p9 = pnand %p2760_p8, %p2754_p5 }
  0x15   :  { %2764 = shalt.err (!%p2761_p9)
}
  0x16   :  { %s2835_s9 = smov 64   ;;  %s2836_s10 = smov 4  }
  0x17   :  { %27 = dma.hbm_to_vmem [thread:$0]  %s3776_s0, 512, %s22_s27, [#allocation4], %s2835_s9, %s2835_s9, %s2836_s10  }
  0x18   :  { %s2837_s13 = smov [#allocation8]  }
  0x19   :  { %s43_s14 = sshll.u32 %s2837_s13, 4  ;;  %s44_s14 = int_to_ptr.vmem [resolvable:$true] %s43_s14 }
  0x1a   :  { %s2773_s1 = scalar_lea.vmem %s44_s14, 3072  ;;  %p2778_p11 = scmp.lt.s32.totalorder %s44_s14, %s44_s14 }
  0x1b   :  { %p2774_p10 = scmp.ne.s32.totalorder %s44_s14, %s2773_s1  ;;  %p2779_p12 = scmp.lt.s32.totalorder %s2773_s1, %s2773_s1 }
  0x1d   :  { %p2780_p13 = por %p2779_p12, %p2778_p11 }
  0x1f   :  { %p2781_p0 = pnand %p2780_p13, %p2774_p10 }
  0x21   :  { %2784 = shalt.err (!%p2781_p0)
}
  0x22   :  { %s2838_s15 = smov 192   ;;  %s2839_s16 = smov 12  }
  0x23   :  { %49 = dma.hbm_to_vmem [thread:$0]  %s3778_s2, 3072, %s44_s14, [#allocation7], %s2838_s15, %s2838_s15, %s2839_s16  }
  0x24   :  { %s2840_s19 = smov [#allocation9]  }
  0x25   :  { %s55_s20 = sshll.u32 %s2840_s19, 4  ;;  %s56_s20 = int_to_ptr.vmem [resolvable:$true] %s55_s20 }
  0x26   :  { %s2793_s0 = scalar_lea.vmem %s56_s20, 3072  ;;  %p2798_p2 = scmp.lt.s32.totalorder %s56_s20, %s56_s20 }
  0x27   :  { %p2794_p1 = scmp.ne.s32.totalorder %s56_s20, %s2793_s0  ;;  %p2799_p3 = scmp.lt.s32.totalorder %s2793_s0, %s2793_s0 }
  0x29   :  { %p2800_p4 = por %p2799_p3, %p2798_p2 }
  0x2b   :  { %p2801_p5 = pnand %p2800_p4, %p2794_p1 }
  0x2d   :  { %2804 = shalt.err (!%p2801_p5)
}
  0x2e   :  { %61 = dma.hbm_to_vmem [thread:$0]  %s3779_s3, 3072, %s56_s20, [#allocation10], %s2838_s15, %s2838_s15, %s2839_s16  }
  0x2f   :  { %2825 = dma.done.wait [#allocation4], 512  }
  0x30   :  { %2826 = vsyncadd [#allocation4], 4294966784 }
  0x31   :  { %2827 = dma.done.wait [#allocation7], 3200  }
  0x32   :  { %2828 = vsyncadd [#allocation7], 4294964096 }
  0x33   :  { %2829 = dma.done.wait [#allocation10], 3072  }
  0x34   :  { %2830 = vsyncadd [#allocation10], 4294964224  ;;  %v3788_v0 = vmov 0.0   ;;  %v3784_v1 = vmov 0   ;;  %vm2843_vm0 = vmmov 0   ;;  %v3051_v48 = vld [vmem:[#allocation6] sm:$0xff]  ;;  %v578_v62 = vlaneseq }
  0x35   :  { %2199 = vmatprep.subr.bf16.mxu1 %v3788_v0  ;;  %316 = vmatprep.mubr.bf16.mxu0 %v3784_v1  ;;  %v2904_v2 = vld [vmem:[#allocation8 + $0xac] ss:$12 sps:$4 sm:$0xff]   ;;  %v2906_v3 = vld [vmem:[#allocation8 + $0xa8] ss:$12 sps:$4 sm:$0xff]   ;;  %v2912_v5 = vld [vmem:[#allocation8 + $0x90] ss:$12 sps:$4 sm:$0xff]   ;;  %v365_v50 = vpack.c.bf16 %v3051_v48, %v3051_v48 }
  0x36   :  { %2215 = vmatprep.mubr.msk.bf16.mxu1 %vm2843_vm0, %v3788_v0  ;;  %3829 = vst [vmem:[#allocation16_spill] sm:$0xff] %v2904_v2  ;;  %284 = vmatprep.subr.bf16.mxu0 %v2904_v2  ;;  %v2909_v4 = vld [vmem:[#allocation8 + $0x94] ss:$12 sps:$4 sm:$0xff]   ;;  %v2915_v6 = vld [vmem:[#allocation8 + $0x7c] ss:$12 sps:$4 sm:$0xff]   ;;  %v579_v63 = vshrl.u32 %v578_v62, 7 }
  0x37   :  { %285 = vmatpush1.bf16.msra.mxu0 %v2906_v3  ;;  %v2918_v7 = vld [vmem:[#allocation8 + $0x78] ss:$12 sps:$4 sm:$0xff]   ;;  %v2924_v9 = vld [vmem:[#allocation8 + $0x60] ss:$12 sps:$4 sm:$0xff]   ;;  %v2926_v10 = vld [vmem:[#allocation8 + $0xb0] ss:$12 sps:$4 sm:$0xff]  }
  0x38   :  { %286 = vmatprep.subr.bf16.mxu0 %v2909_v4  ;;  %v2921_v8 = vld [vmem:[#allocation8 + $0x64] ss:$12 sps:$4 sm:$0xff]   ;;  %v2929_v11 = vld [vmem:[#allocation8 + $0x4c] ss:$12 sps:$4 sm:$0xff]   ;;  %2200 = vmatpush3.bf16.msra.mxu1 %v2926_v10  ;;  %v2936_v13 = vld [vmem:[#allocation8 + $0x48] ss:$12 sps:$4 sm:$0xff]  }
  0x39   :  { %v2932_v12 = vld [vmem:[#allocation8 + $0x98] ss:$12 sps:$4 sm:$0xff]   ;;  %2201 = vmatprep.subr.bf16.mxu1 %v3788_v0  ;;  %v2939_v14 = vld [vmem:[#allocation8 + $0x34] ss:$12 sps:$4 sm:$0xff]   ;;  %v2946_v16 = vld [vmem:[#allocation8 + $0x30] ss:$12 sps:$4 sm:$0xff]  }
  0x3a   :  { %v2942_v15 = vld [vmem:[#allocation8 + $0x80] ss:$12 sps:$4 sm:$0xff]   ;;  %v2949_v17 = vld [vmem:[#allocation8 + $0x1c] ss:$12 sps:$4 sm:$0xff]   ;;  %v2956_v19 = vld [vmem:[#allocation8 + $0x18] ss:$12 sps:$4 sm:$0xff]  }
  0x3b   :  { %287 = vmatpush1.bf16.msra.mxu0 %v2912_v5  ;;  %v2952_v18 = vld [vmem:[#allocation8 + $0x68] ss:$12 sps:$4 sm:$0xff]   ;;  %v2959_v20 = vld [vmem:[#allocation8 + $0x4] ss:$12 sps:$4 sm:$0xff]   ;;  %v2966_v22 = vld [vmem:[#allocation8] ss:$12 sps:$4 sm:$0xff]  }
  0x3c   :  { %288 = vmatprep.subr.bf16.mxu0 %v2915_v6  ;;  %2202 = vmatpush3.bf16.msra.mxu1 %v2932_v12  ;;  %v2962_v21 = vld [vmem:[#allocation8 + $0x50] ss:$12 sps:$4 sm:$0xff]   ;;  %v2969_v23 = vld [vmem:[#allocation9 + $0xac] ss:$12 sps:$4 sm:$0xff]   ;;  %v2976_v26 = vld [vmem:[#allocation9 + $0xa8] ss:$12 sps:$4 sm:$0xff]  }
  0x3d   :  { %2203 = vmatprep.subr.bf16.mxu1 %v3788_v0  ;;  %v2972_v24 = vld [vmem:[#allocation8 + $0x38] ss:$12 sps:$4 sm:$0xff]   ;;  %v2979_v27 = vld [vmem:[#allocation9 + $0x94] ss:$12 sps:$4 sm:$0xff]   ;;  %v2986_v29 = vld [vmem:[#allocation9 + $0x90] ss:$12 sps:$4 sm:$0xff]  }
  0x3e   :  { %v155_v25 = vld [vmem:[#allocation3] sm:$0xf]  ;;  %v2982_v28 = vld [vmem:[#allocation8 + $0x20] ss:$12 sps:$4 sm:$0xff]   ;;  %v2990_v30 = vld [vmem:[#allocation9 + $0x7c] ss:$12 sps:$4 sm:$0xff]  }
  0x3f   :  { %289 = vmatpush1.bf16.msra.mxu0 %v2918_v7  ;;  %v2993_v31 = vld [vmem:[#allocation8 + $0x8] ss:$12 sps:$4 sm:$0xff]   ;;  %v2997_v32 = vld [vmem:[#allocation9 + $0x78] ss:$12 sps:$4 sm:$0xff]   ;;  %v3003_v34 = vld [vmem:[#allocation9 + $0xb0] ss:$12 sps:$4 sm:$0xff]  }
  0x40   :  { %290 = vmatprep.subr.bf16.mxu0 %v2921_v8  ;;  %2204 = vmatpush3.bf16.msra.mxu1 %v2942_v15  ;;  %v3000_v33 = vld [vmem:[#allocation9 + $0x64] ss:$12 sps:$4 sm:$0xff]   ;;  %v3007_v35 = vld [vmem:[#allocation9 + $0x60] ss:$12 sps:$4 sm:$0xff]   ;;  %v3019_v38 = vld [vmem:[#allocation9 + $0x48] ss:$12 sps:$4 sm:$0xff]  }
  0x41   :  { %2205 = vmatprep.subr.bf16.mxu1 %v3788_v0  ;;  %v3010_v36 = vld [vmem:[#allocation9 + $0x4c] ss:$12 sps:$4 sm:$0xff]   ;;  %v3022_v39 = vld [vmem:[#allocation9 + $0x34] ss:$12 sps:$4 sm:$0xff]   ;;  %v3029_v41 = vld [vmem:[#allocation9 + $0x30] ss:$12 sps:$4 sm:$0xff]  }
  0x42   :  { %v3013_v37 = vld [vmem:[#allocation9 + $0x98] ss:$12 sps:$4 sm:$0xff]   ;;  %3830 = vst [vmem:[#allocation17_spill] sm:$0xff] %v3022_v39  ;;  %v3025_v40 = vld [vmem:[#allocation9 + $0x80] ss:$12 sps:$4 sm:$0xff]   ;;  %3831 = vst [vmem:[#allocation18_spill] sm:$0xff] %v3029_v41 }
  0x43   :  { %291 = vmatpush1.bf16.msra.mxu0 %v2924_v9  ;;  %v3032_v42 = vld [vmem:[#allocation9 + $0x1c] ss:$12 sps:$4 sm:$0xff]   ;;  %v3039_v44 = vld [vmem:[#allocation9 + $0x18] ss:$12 sps:$4 sm:$0xff]   ;;  %v3049_v47 = vld [vmem:[#allocation9] ss:$12 sps:$4 sm:$0xff]  }
  0x44   :  { %292 = vmatprep.subr.bf16.mxu0 %v2929_v11  ;;  %2206 = vmatpush3.bf16.msra.mxu1 %v2952_v18  ;;  %3832 = vst [vmem:[#allocation19_spill] sm:$0xff] %v3032_v42  ;;  %v3035_v43 = vld [vmem:[#allocation9 + $0x68] ss:$12 sps:$4 sm:$0xff]   ;;  %3833 = vst [vmem:[#allocation20_spill] sm:$0xff] %v3039_v44  ;;  %v3042_v45 = vld [vmem:[#allocation9 + $0x4] ss:$12 sps:$4 sm:$0xff]  }
  0x45   :  { %2207 = vmatprep.subr.bf16.mxu1 %v3788_v0  ;;  %3834 = vst [vmem:[#allocation21_spill] sm:$0xff] %v3042_v45  ;;  %v3045_v46 = vld [vmem:[#allocation9 + $0x50] ss:$12 sps:$4 sm:$0xff]   ;;  %3836 = vst [vmem:[#allocation23_spill] sm:$0xff] %v3049_v47  ;;  %v3055_v49 = vld [vmem:[#allocation9 + $0x38] ss:$12 sps:$4 sm:$0xff]  }
  0x46   :  { %3835 = vst [vmem:[#allocation22_spill] sm:$0xff] %v3045_v46  ;;  %3837 = vst [vmem:[#allocation24_spill] sm:$0xff] %v3055_v49  ;;  %v3063_v51 = vld [vmem:[#allocation9 + $0x20] ss:$12 sps:$4 sm:$0xff]   ;;  %v3070_v52 = vld [vmem:[#allocation9 + $0x8] ss:$12 sps:$4 sm:$0xff]  }
  0x47   :  { %293 = vmatpush1.bf16.msra.mxu0 %v2936_v13  ;;  %3838 = vst [vmem:[#allocation25_spill] sm:$0xff] %v3063_v51  ;;  %3839 = vst [vmem:[#allocation26_spill] sm:$0xff] %v3070_v52  ;;  %v626_v53 = vld [vmem:[#allocation3 + $0x4] sm:$0xf] }
  0x48   :  { %294 = vmatprep.subr.bf16.mxu0 %v2939_v14  ;;  %2208 = vmatpush3.bf16.msra.mxu1 %v2962_v21 }
  0x49   :  { %2209 = vmatprep.subr.bf16.mxu1 %v3788_v0 }
  0x4b   :  { %295 = vmatpush1.bf16.msra.mxu0 %v2946_v16 }
  0x4c   :  { %296 = vmatprep.subr.bf16.mxu0 %v2949_v17  ;;  %2210 = vmatpush3.bf16.msra.mxu1 %v2972_v24 }
  0x4d   :  { %2211 = vmatprep.subr.bf16.mxu1 %v3788_v0 }
  0x4f   :  { %297 = vmatpush1.bf16.msra.mxu0 %v2956_v19 }
  0x50   :  { %298 = vmatprep.subr.bf16.mxu0 %v2959_v20  ;;  %2212 = vmatpush3.bf16.msra.mxu1 %v2982_v28 }
  0x51   :  { %2213 = vmatprep.subr.bf16.mxu1 %v3788_v0 }
  0x53   :  { %299 = vmatpush1.bf16.msra.mxu0 %v2966_v22 }
  0x54   :  { %494 = vmatprep.subr.bf16.mxu0 %v2969_v23  ;;  %2214 = vmatpush3.bf16.msra.mxu1 %v2993_v31 }
  0x55   :  { %2219 = vmatprep.subr.bf16.mxu1 %v3788_v0 }
  0x56   :  { %317 = vmatmul.mubr.bf16.vlgmr.msra.gmra.mxu0 %v155_v25 }
  0x57   :  { %495 = vmatpush1.bf16.msra.mxu0 %v2976_v26  ;;  %526 = vmatprep.mubr.bf16.mxu0 %v3784_v1 }
  0x58   :  { %496 = vmatprep.subr.bf16.mxu0 %v2979_v27  ;;  %2216 = vmatmul.mubr.bf16.vlgmr.msra.gmra.mxu1 %v155_v25  ;;  %v580_v25 = vsub.s32 0, %v579_v63 }
  0x59   :  { %2220 = vmatpush3.bf16.msra.mxu1 %v3003_v34  ;;  %2235 = vmatprep.mubr.msk.bf16.mxu1 %vm2843_vm0, %v3788_v0 }
  0x5a   :  { %2221 = vmatprep.subr.bf16.mxu1 %v3788_v0 }
  0x5b   :  { %497 = vmatpush1.bf16.msra.mxu0 %v2986_v29 }
  0x5c   :  { %498 = vmatprep.subr.bf16.mxu0 %v2990_v30 }
  0x5d   :  { %2222 = vmatpush3.bf16.msra.mxu1 %v3013_v37 }
  0x5e   :  { %2223 = vmatprep.subr.bf16.mxu1 %v3788_v0 }
  0x5f   :  { %499 = vmatpush1.bf16.msra.mxu0 %v2997_v32 }
  0x60   :  { %500 = vmatprep.subr.bf16.mxu0 %v3000_v33 }
  0x61   :  { %2224 = vmatpush3.bf16.msra.mxu1 %v3025_v40 }
  0x62   :  { %2225 = vmatprep.subr.bf16.mxu1 %v3788_v0 }
  0x63   :  { %501 = vmatpush1.bf16.msra.mxu0 %v3007_v35 }
  0x64   :  { %502 = vmatprep.subr.bf16.mxu0 %v3010_v36 }
  0x65   :  { %2226 = vmatpush3.bf16.msra.mxu1 %v3035_v43 }
  0x66   :  { %2227 = vmatprep.subr.bf16.mxu1 %v3788_v0 }
  0x67   :  { %503 = vmatpush1.bf16.msra.mxu0 %v3019_v38 }
  0x68   :  { %504 = vmatprep.subr.bf16.mxu0 %v3022_v39 }
  0x69   :  { %2228 = vmatpush3.bf16.msra.mxu1 %v3045_v46 }
  0x6a   :  { %2229 = vmatprep.subr.bf16.mxu1 %v3788_v0 }
  0x6b   :  { %505 = vmatpush1.bf16.msra.mxu0 %v3029_v41 }
  0x6c   :  { %506 = vmatprep.subr.bf16.mxu0 %v3032_v42 }
  0x6d   :  { %2230 = vmatpush3.bf16.msra.mxu1 %v3055_v49 }
  0x6e   :  { %2231 = vmatprep.subr.bf16.mxu1 %v3788_v0 }
  0x6f   :  { %507 = vmatpush1.bf16.msra.mxu0 %v3039_v44 }
  0x70   :  { %508 = vmatprep.subr.bf16.mxu0 %v3042_v45 }
  0x71   :  { %2232 = vmatpush3.bf16.msra.mxu1 %v3063_v51 }
  0x72   :  { %2233 = vmatprep.subr.bf16.mxu1 %v3788_v0 }
  0x73   :  { %509 = vmatpush1.bf16.msra.mxu0 %v3049_v47 }
  0x74   :  { %627 = vmatprep.subr.bf16.mxu0 %v2904_v2 }
  0x75   :  { %2234 = vmatpush3.bf16.msra.mxu1 %v3070_v52 }
  0x76   :  { %527 = vmatmul.mubr.bf16.vlgmr.msra.gmra.mxu0 %v365_v50  ;;  %2239 = vmatprep.subr.bf16.mxu1 %v3788_v0 }
  0x77   :  { %628 = vmatpush1.bf16.msra.mxu0 %v2906_v3  ;;  %659 = vmatprep.mubr.bf16.mxu0 %v3784_v1 }
  0x78   :  { %629 = vmatprep.subr.bf16.mxu0 %v2909_v4  ;;  %2236 = vmatmul.mubr.bf16.vlgmr.msra.gmra.mxu1 %v365_v50  ;;  %v151_v50 = vld [vmem:[%s3780_s4] sm:$0x3] }
  0x79   :  { %2240 = vmatpush3.bf16.msra.mxu1 %v2926_v10  ;;  %2255 = vmatprep.mubr.msk.bf16.mxu1 %vm2843_vm0, %v3788_v0 }
  0x7a   :  { %2241 = vmatprep.subr.bf16.mxu1 %v3788_v0 }
  0x7b   :  { %630 = vmatpush1.bf16.msra.mxu0 %v2912_v5 }
  0x7c   :  { %631 = vmatprep.subr.bf16.mxu0 %v2915_v6 }
  0x7d   :  { %2242 = vmatpush3.bf16.msra.mxu1 %v2932_v12 }
  0x7e   :  { %2243 = vmatprep.subr.bf16.mxu1 %v3788_v0 }
  0x7f   :  { %632 = vmatpush1.bf16.msra.mxu0 %v2918_v7 }
  0x80   :  { %633 = vmatprep.subr.bf16.mxu0 %v2921_v8 }
  0x81   :  { %2244 = vmatpush3.bf16.msra.mxu1 %v2942_v15 }
  0x82   :  { %2245 = vmatprep.subr.bf16.mxu1 %v3788_v0 }
  0x83   :  { %634 = vmatpush1.bf16.msra.mxu0 %v2924_v9 }
  0x84   :  { %635 = vmatprep.subr.bf16.mxu0 %v2929_v11 }
  0x85   :  { %2246 = vmatpush3.bf16.msra.mxu1 %v2952_v18 }
  0x86   :  { %2247 = vmatprep.subr.bf16.mxu1 %v3788_v0 }
  0x87   :  { %636 = vmatpush1.bf16.msra.mxu0 %v2936_v13 }
  0x88   :  { %637 = vmatprep.subr.bf16.mxu0 %v2939_v14 }
  0x89   :  { %2248 = vmatpush3.bf16.msra.mxu1 %v2962_v21 }
  0x8a   :  { %2249 = vmatprep.subr.bf16.mxu1 %v3788_v0 }
  0x8b   :  { %638 = vmatpush1.bf16.msra.mxu0 %v2946_v16 }
  0x8c   :  { %639 = vmatprep.subr.bf16.mxu0 %v2949_v17 }
  0x8d   :  { %2250 = vmatpush3.bf16.msra.mxu1 %v2972_v24 }
  0x8e   :  { %2251 = vmatprep.subr.bf16.mxu1 %v3788_v0 }
  0x8f   :  { %640 = vmatpush1.bf16.msra.mxu0 %v2956_v19 }
  0x90   :  { %641 = vmatprep.subr.bf16.mxu0 %v2959_v20 }
  0x91   :  { %2252 = vmatpush3.bf16.msra.mxu1 %v2982_v28 }
  0x92   :  { %2253 = vmatprep.subr.bf16.mxu1 %v3788_v0 }
  0x93   :  { %642 = vmatpush1.bf16.msra.mxu0 %v2966_v22 }
  0x94   :  { %708 = vmatprep.subr.bf16.mxu0 %v2969_v23 }
  0x95   :  { %2254 = vmatpush3.bf16.msra.mxu1 %v2993_v31 }
  0x96   :  { %2259 = vmatprep.subr.bf16.mxu1 %v3788_v0  ;;  %660 = vmatmul.mubr.bf16.vlgmr.msra.gmra.mxu0 %v626_v53 }
  0x97   :  { %709 = vmatpush1.bf16.msra.mxu0 %v2976_v26  ;;  %740 = vmatprep.mubr.bf16.mxu0 %v3784_v1 }
  0x98   :  { %2256 = vmatmul.mubr.bf16.vlgmr.msra.gmra.mxu1 %v626_v53  ;;  %710 = vmatprep.subr.bf16.mxu0 %v2979_v27  ;;  %v3145_v53 = vrot.slane %v151_v50, %v580_v25 }
  0x99   :  { %2260 = vmatpush3.bf16.msra.mxu1 %v3003_v34  ;;  %2275 = vmatprep.mubr.msk.bf16.mxu1 %vm2843_vm0, %v3788_v0 }
  0x9a   :  { %2261 = vmatprep.subr.bf16.mxu1 %v3788_v0 }
  0x9b   :  { %711 = vmatpush1.bf16.msra.mxu0 %v2986_v29 }
  0x9c   :  { %712 = vmatprep.subr.bf16.mxu0 %v2990_v30 }
  0x9d   :  { %2262 = vmatpush3.bf16.msra.mxu1 %v3013_v37 }
  0x9e   :  { %2263 = vmatprep.subr.bf16.mxu1 %v3788_v0 }
  0x9f   :  { %713 = vmatpush1.bf16.msra.mxu0 %v2997_v32 }
  0xa0   :  { %714 = vmatprep.subr.bf16.mxu0 %v3000_v33 }
  0xa1   :  { %2264 = vmatpush3.bf16.msra.mxu1 %v3025_v40 }
  0xa2   :  { %2265 = vmatprep.subr.bf16.mxu1 %v3788_v0 }
  0xa3   :  { %715 = vmatpush1.bf16.msra.mxu0 %v3007_v35 }
  0xa4   :  { %716 = vmatprep.subr.bf16.mxu0 %v3010_v36 }
  0xa5   :  { %2266 = vmatpush3.bf16.msra.mxu1 %v3035_v43 }
  0xa6   :  { %2267 = vmatprep.subr.bf16.mxu1 %v3788_v0 }
  0xa7   :  { %717 = vmatpush1.bf16.msra.mxu0 %v3019_v38 }
  0xa8   :  { %718 = vmatprep.subr.bf16.mxu0 %v3022_v39 }
  0xa9   :  { %2268 = vmatpush3.bf16.msra.mxu1 %v3045_v46 }
  0xaa   :  { %2269 = vmatprep.subr.bf16.mxu1 %v3788_v0 }
  0xab   :  { %719 = vmatpush1.bf16.msra.mxu0 %v3029_v41 }
  0xac   :  { %720 = vmatprep.subr.bf16.mxu0 %v3032_v42 }
  0xad   :  { %2270 = vmatpush3.bf16.msra.mxu1 %v3055_v49 }
  0xae   :  { %2271 = vmatprep.subr.bf16.mxu1 %v3788_v0 }
  0xaf   :  { %721 = vmatpush1.bf16.msra.mxu0 %v3039_v44 }
  0xb0   :  { %722 = vmatprep.subr.bf16.mxu0 %v3042_v45 }
  0xb1   :  { %2272 = vmatpush3.bf16.msra.mxu1 %v3063_v51 }
  0xb2   :  { %2273 = vmatprep.subr.bf16.mxu1 %v3788_v0 }
  0xb3   :  { %723 = vmatpush1.bf16.msra.mxu0 %v3049_v47 }
  0xb4   :  { %819 = vmatprep.subr.bf16.mxu0 %v2904_v2 }
  0xb5   :  { %2274 = vmatpush3.bf16.msra.mxu1 %v3070_v52 }
  0xb6   :  { %2279 = vmatprep.subr.bf16.mxu1 %v3788_v0  ;;  %v584_v0 = vsub.s32 1, %v579_v63 }
 0x116   :  { %v318_v54 = vpop.f32.mrf.mxu0 }
 0x118   :  { %v320_v55 = vpop.f32.mrf.mxu0  ;;  %v359_v58 = vpop.f32.mrf.mxu1 }
 0x11a   :  { %v322_v56 = vpop.f32.mrf.mxu0  ;;  %v2217_v59 = vpop.f32.mrf.mxu1 }
 0x11c   :  { %v323_v57 = vpop.f32.mrf.mxu0  ;;  %v362_v60 = vpop.f32.mrf.mxu1 }
 0x11d   :  { %v3148_v60 = vrot.slane %v151_v50, %v584_v0 }
 0x11e   :  { %v2218_v61 = vpop.f32.mrf.mxu1 }
 0x136   :  { %v528_v1 = vpop.f32.mrf.mxu0 }
 0x137   :  { %v575_v2 = vadd.f32 %v528_v1, %v318_v54 }
 0x138   :  { %v530_v52 = vpop.f32.mrf.mxu0  ;;  %v569_v45 = vpop.f32.mrf.mxu1 }
 0x139   :  { %v588_v56 = vadd.f32 %v3145_v53, %v575_v2  ;;  %v576_v59 = vadd.f32 %v530_v52, %v320_v55  ;;  %v3154_v2 = vld [vmem:[%s3782_s6] ss:$0 sm:$0xff] }
 0x13a   :  { %v532_v57 = vpop.f32.mrf.mxu0  ;;  %v2237_v51 = vpop.f32.mrf.mxu1 }
 0x13b   :  { %v2037_v47 = vmul.f32 -1.442695, %v588_v56  ;;  %v589_v62 = vadd.f32 %v3148_v60, %v576_v59  ;;  %v3160_v51 = vld [vmem:[%s3781_s5] ss:$0 sm:$0xff] }
 0x13c   :  { %v533_v61 = vpop.f32.mrf.mxu0  ;;  %v572_v25 = vpop.f32.mrf.mxu1 }
 0x13d   :  { %2595 = vpow2.f32 %v2037_v47  ;;  %v2038_v44 = vmul.f32 -1.442695, %v589_v62  ;;  %v615_v47 = vadd.f32 %v3154_v2, %v569_v45  ;;  %v3841_v25 = vmov 0  }
 0x13e   :  { %v2238_v42 = vpop.f32.mrf.mxu1 }
 0x13f   :  { %2597 = vpow2.f32 %v2038_v44  ;;  %v608_v42 = vadd.f32 %v3160_v51, %v359_v58  ;;  %v3840_v58 = vmov 0.0  }
 0x14a   :  { %v2596_v1 = vpop.eup %2595 }
 0x14b   :  { %v596_v54 = vadd.f32 1.0, %v2596_v1 }
 0x14c   :  { %v2598_v63 = vpop.eup %2597 }
 0x14d   :  { %2599 = vrcp.f32 %v596_v54  ;;  %v597_v0 = vadd.f32 1.0, %v2598_v63 }
 0x14f   :  { %2601 = vrcp.f32 %v597_v0 }
 0x158   :  { %v3199_v1 = vpop.f32.mrf.mxu1 }
 0x15a   :  { %v2600_v52 = vpop.eup %2599  ;;  %v2257_v63 = vpop.f32.mrf.mxu1 }
 0x15b   :  { %v616_v44 = vmul.f32 %v2600_v52, %v615_v47 }
 0x15c   :  { %v2602_v50 = vpop.eup %2601  ;;  %v705_v47 = vpop.f32.mrf.mxu1 }
 0x15d   :  { %v617_v55 = vadd.f32 %v616_v44, %v608_v42  ;;  %v619_v56 = vsub.f32 1.0, %v2602_v50  ;;  %v621_v61 = vmul.f32 %v2602_v50, %v3051_v48  ;;  %v661_v48 = vpop.f32.mrf.mxu0  ;;  %v818_v44 = vld [vmem:[#allocation3 + $0x8] sm:$0xf] }
 0x15e   :  { %v2258_v42 = vpop.f32.mrf.mxu1  ;;  %v3843_v50 = vld [vmem:[#allocation20_spill] sm:$0xff] }
 0x15f   :  { %2603 = vtanh.f32 %v617_v55  ;;  %v663_v54 = vpop.f32.mrf.mxu0  ;;  %v3842_v55 = vld [vmem:[#allocation19_spill] sm:$0xff] }
 0x161   :  { %v665_v0 = vpop.f32.mrf.mxu0 }
 0x163   :  { %v666_v52 = vpop.f32.mrf.mxu0 }
 0x16c   :  { %v2604_v57 = vpop.eup %2603 }
 0x16d   :  { %v620_v59 = vmul.f32 %v2604_v57, %v619_v56  ;;  %v3844_v56 = vld [vmem:[#allocation25_spill] sm:$0xff] }
 0x16e   :  { %v3845_v57 = vld [vmem:[#allocation21_spill] sm:$0xff] }
 0x16f   :  { %v3164_v62 = vadd.f32 %v621_v61, %v620_v59  ;;  %v3846_v59 = vld [vmem:[#allocation23_spill] sm:$0xff]  ;;  %v3847_v61 = vld [vmem:[#allocation26_spill] sm:$0xff] }
 0x171   :  { %v623_v45 = vpack.c.bf16 %v3164_v62, %v3164_v62 }
 0x173   :  { %624 = vst [vmem:[#allocation11] sm:$0xf] %v623_v45  ;;  %741 = vmatmul.mubr.bf16.vlgmr.msra.gmra.mxu0 %v623_v45  ;;  %2276 = vmatmul.mubr.bf16.vlgmr.msra.gmra.mxu1 %v623_v45  ;;  %v3848_v45 = vld [vmem:[#allocation16_spill] sm:$0xff] }
 0x174   :  { %820 = vmatpush1.bf16.msra.mxu0 %v2906_v3  ;;  %2280 = vmatpush3.bf16.msra.mxu1 %v2926_v10 }
 0x175   :  { %821 = vmatprep.subr.bf16.mxu0 %v2909_v4  ;;  %2281 = vmatprep.subr.bf16.mxu1 %v3840_v58 }
 0x176   :  { %851 = vmatprep.mubr.bf16.mxu0 %v3841_v25  ;;  %2295 = vmatprep.mubr.msk.bf16.mxu1 %vm2843_vm0, %v3840_v58 }
 0x178   :  { %822 = vmatpush1.bf16.msra.mxu0 %v2912_v5  ;;  %2282 = vmatpush3.bf16.msra.mxu1 %v2932_v12 }
 0x179   :  { %823 = vmatprep.subr.bf16.mxu0 %v2915_v6  ;;  %2283 = vmatprep.subr.bf16.mxu1 %v3840_v58 }
 0x17c   :  { %824 = vmatpush1.bf16.msra.mxu0 %v2918_v7  ;;  %2284 = vmatpush3.bf16.msra.mxu1 %v2942_v15 }
 0x17d   :  { %825 = vmatprep.subr.bf16.mxu0 %v2921_v8  ;;  %2285 = vmatprep.subr.bf16.mxu1 %v3840_v58 }
 0x180   :  { %826 = vmatpush1.bf16.msra.mxu0 %v2924_v9  ;;  %2286 = vmatpush3.bf16.msra.mxu1 %v2952_v18 }
 0x181   :  { %827 = vmatprep.subr.bf16.mxu0 %v2929_v11  ;;  %2287 = vmatprep.subr.bf16.mxu1 %v3840_v58 }
 0x184   :  { %828 = vmatpush1.bf16.msra.mxu0 %v2936_v13  ;;  %2288 = vmatpush3.bf16.msra.mxu1 %v2962_v21 }
 0x185   :  { %829 = vmatprep.subr.bf16.mxu0 %v2939_v14  ;;  %2289 = vmatprep.subr.bf16.mxu1 %v3840_v58 }
 0x188   :  { %830 = vmatpush1.bf16.msra.mxu0 %v2946_v16  ;;  %2290 = vmatpush3.bf16.msra.mxu1 %v2972_v24 }
 0x189   :  { %831 = vmatprep.subr.bf16.mxu0 %v2949_v17  ;;  %2291 = vmatprep.subr.bf16.mxu1 %v3840_v58 }
 0x18c   :  { %832 = vmatpush1.bf16.msra.mxu0 %v2956_v19  ;;  %2292 = vmatpush3.bf16.msra.mxu1 %v2982_v28 }
 0x18d   :  { %833 = vmatprep.subr.bf16.mxu0 %v2959_v20  ;;  %2293 = vmatprep.subr.bf16.mxu1 %v3840_v58 }
 0x190   :  { %834 = vmatpush1.bf16.msra.mxu0 %v2966_v22  ;;  %2294 = vmatpush3.bf16.msra.mxu1 %v2993_v31 }
 0x191   :  { %900 = vmatprep.subr.bf16.mxu0 %v2969_v23  ;;  %2299 = vmatprep.subr.bf16.mxu1 %v3840_v58 }
 0x193   :  { %852 = vmatmul.mubr.bf16.vlgmr.msra.gmra.mxu0 %v818_v44  ;;  %2296 = vmatmul.mubr.bf16.vlgmr.msra.gmra.mxu1 %v818_v44 }
 0x194   :  { %901 = vmatpush1.bf16.msra.mxu0 %v2976_v26  ;;  %2300 = vmatpush3.bf16.msra.mxu1 %v3003_v34 }
 0x195   :  { %902 = vmatprep.subr.bf16.mxu0 %v2979_v27  ;;  %2301 = vmatprep.subr.bf16.mxu1 %v3840_v58 }
 0x196   :  { %932 = vmatprep.mubr.bf16.mxu0 %v3841_v25  ;;  %2315 = vmatprep.mubr.msk.bf16.mxu1 %vm2843_vm0, %v3840_v58 }
 0x198   :  { %903 = vmatpush1.bf16.msra.mxu0 %v2986_v29  ;;  %2302 = vmatpush3.bf16.msra.mxu1 %v3013_v37 }
 0x199   :  { %904 = vmatprep.subr.bf16.mxu0 %v2990_v30  ;;  %2303 = vmatprep.subr.bf16.mxu1 %v3840_v58 }
 0x19c   :  { %905 = vmatpush1.bf16.msra.mxu0 %v2997_v32  ;;  %2304 = vmatpush3.bf16.msra.mxu1 %v3025_v40 }
 0x19d   :  { %906 = vmatprep.subr.bf16.mxu0 %v3000_v33  ;;  %2305 = vmatprep.subr.bf16.mxu1 %v3840_v58 }
 0x1a0   :  { %907 = vmatpush1.bf16.msra.mxu0 %v3007_v35  ;;  %2306 = vmatpush3.bf16.msra.mxu1 %v3035_v43 }
 0x1a1   :  { %908 = vmatprep.subr.bf16.mxu0 %v3010_v36  ;;  %2307 = vmatprep.subr.bf16.mxu1 %v3840_v58 }
 0x1a4   :  { %909 = vmatpush1.bf16.msra.mxu0 %v3019_v38  ;;  %2308 = vmatpush3.bf16.msra.mxu1 %v3045_v46 }
 0x1a5   :  { %910 = vmatprep.subr.bf16.mxu0 %v3022_v39  ;;  %2309 = vmatprep.subr.bf16.mxu1 %v3840_v58 }
 0x1a8   :  { %911 = vmatpush1.bf16.msra.mxu0 %v3029_v41  ;;  %2310 = vmatpush3.bf16.msra.mxu1 %v3055_v49 }
 0x1a9   :  { %912 = vmatprep.subr.bf16.mxu0 %v3842_v55  ;;  %2311 = vmatprep.subr.bf16.mxu1 %v3840_v58 }
 0x1ac   :  { %913 = vmatpush1.bf16.msra.mxu0 %v3843_v50  ;;  %2312 = vmatpush3.bf16.msra.mxu1 %v3844_v56 }
 0x1ad   :  { %914 = vmatprep.subr.bf16.mxu0 %v3845_v57  ;;  %2313 = vmatprep.subr.bf16.mxu1 %v3840_v58 }
 0x1b0   :  { %915 = vmatpush1.bf16.msra.mxu0 %v3846_v59  ;;  %2314 = vmatpush3.bf16.msra.mxu1 %v3847_v61 }
 0x1b1   :  { %1011 = vmatprep.subr.bf16.mxu0 %v3848_v45  ;;  %2319 = vmatprep.subr.bf16.mxu1 %v3840_v58 }
 0x233   :  { %v742_v63 = vpop.f32.mrf.mxu0  ;;  %v783_v0 = vpop.f32.mrf.mxu1 }
 0x234   :  { %v789_v47 = vadd.f32 %v742_v63, %v661_v48  ;;  %v806_v63 = vadd.f32 %v3154_v2, %v783_v0  ;;  %v3856_v0 = vld [vmem:[#allocation21_spill] sm:$0xff] }
 0x235   :  { %v744_v52 = vpop.f32.mrf.mxu0  ;;  %v2277_v42 = vpop.f32.mrf.mxu1 }
 0x236   :  { %v791_v44 = vadd.f32 %v789_v47, %v3145_v53  ;;  %v790_v55 = vadd.f32 %v744_v52, %v663_v54  ;;  %v3857_v47 = vld [vmem:[#allocation23_spill] sm:$0xff]  ;;  %v3858_v52 = vld [vmem:[#allocation26_spill] sm:$0xff] }
 0x237   :  { %v746_v56 = vpop.f32.mrf.mxu0  ;;  %v786_v50 = vpop.f32.mrf.mxu1 }
 0x238   :  { %v2041_v57 = vmul.f32 -1.442695, %v791_v44  ;;  %v792_v61 = vadd.f32 %v790_v55, %v3148_v60  ;;  %v805_v50 = vadd.f32 %v3160_v51, %v3199_v1  ;;  %v3854_v1 = vld [vmem:[#allocation20_spill] sm:$0xff] }
 0x239   :  { %v747_v49 = vpop.f32.mrf.mxu0  ;;  %v2278_v41 = vpop.f32.mrf.mxu1  ;;  %v3859_v44 = vld [vmem:[#allocation16_spill] sm:$0xff] }
 0x23a   :  { %2605 = vpow2.f32 %v2041_v57  ;;  %v2042_v59 = vmul.f32 -1.442695, %v792_v61 }
 0x23c   :  { %2607 = vpow2.f32 %v2042_v59 }
 0x247   :  { %v2606_v45 = vpop.eup %2605 }
 0x248   :  { %v799_v39 = vadd.f32 1.0, %v2606_v45  ;;  %v3855_v45 = vld [vmem:[#allocation25_spill] sm:$0xff] }
 0x249   :  { %v2608_v46 = vpop.eup %2607 }
 0x24a   :  { %2609 = vrcp.f32 %v799_v39  ;;  %v800_v48 = vadd.f32 1.0, %v2608_v46  ;;  %v3852_v46 = vld [vmem:[#allocation24_spill] sm:$0xff] }
 0x24c   :  { %2611 = vrcp.f32 %v800_v48 }
 0x257   :  { %v2610_v42 = vpop.eup %2609 }
 0x258   :  { %v807_v56 = vmul.f32 %v2610_v42, %v806_v63 }
 0x259   :  { %v2612_v41 = vpop.eup %2611 }
 0x25a   :  { %v808_v49 = vadd.f32 %v807_v56, %v805_v50  ;;  %v810_v54 = vsub.f32 1.0, %v2612_v41  ;;  %v812_v59 = vmul.f32 %v2612_v41, %v3164_v62  ;;  %v3853_v62 = vld [vmem:[#allocation19_spill] sm:$0xff] }
 0x25c   :  { %2613 = vtanh.f32 %v808_v49 }
 0x269   :  { %v2614_v55 = vpop.eup %2613 }
 0x26a   :  { %v811_v57 = vmul.f32 %v2614_v55, %v810_v54 }
 0x26c   :  { %v3246_v61 = vadd.f32 %v812_v59, %v811_v57 }
 0x26e   :  { %v814_v39 = vpack.c.bf16 %v3246_v61, %v3246_v61 }
 0x270   :  { %816 = vst [vmem:[#allocation11 + $0x4] sm:$0xf] %v814_v39  ;;  %933 = vmatmul.mubr.bf16.vlgmr.msra.gmra.mxu0 %v814_v39  ;;  %2316 = vmatmul.mubr.bf16.vlgmr.msra.gmra.mxu1 %v814_v39 }
 0x271   :  { %1012 = vmatpush1.bf16.msra.mxu0 %v2906_v3  ;;  %2320 = vmatpush3.bf16.msra.mxu1 %v2926_v10  ;;  %v853_v3 = vpop.f32.mrf.mxu0 }
 0x272   :  { %1013 = vmatprep.subr.bf16.mxu0 %v2909_v4  ;;  %2321 = vmatprep.subr.bf16.mxu1 %v3840_v58  ;;  %v3281_v4 = vpop.f32.mrf.mxu1 }
 0x273   :  { %1043 = vmatprep.mubr.bf16.mxu0 %v3841_v25  ;;  %2335 = vmatprep.mubr.msk.bf16.mxu1 %vm2843_vm0, %v3840_v58 }
 0x275   :  { %1014 = vmatpush1.bf16.msra.mxu0 %v2912_v5  ;;  %2322 = vmatpush3.bf16.msra.mxu1 %v2932_v12  ;;  %v855_v5 = vpop.f32.mrf.mxu0  ;;  %v3849_v12 = vld [vmem:[#allocation22_spill] sm:$0xff] }
 0x276   :  { %1015 = vmatprep.subr.bf16.mxu0 %v2915_v6  ;;  %2323 = vmatprep.subr.bf16.mxu1 %v3840_v58  ;;  %v2297_v6 = vpop.f32.mrf.mxu1 }
 0x279   :  { %1016 = vmatpush1.bf16.msra.mxu0 %v2918_v7  ;;  %2324 = vmatpush3.bf16.msra.mxu1 %v2942_v15  ;;  %v857_v7 = vpop.f32.mrf.mxu0 }
 0x27a   :  { %1017 = vmatprep.subr.bf16.mxu0 %v2921_v8  ;;  %2325 = vmatprep.subr.bf16.mxu1 %v3840_v58  ;;  %v897_v8 = vpop.f32.mrf.mxu1 }
 0x27c   :  { %v2298_v10 = vpop.f32.mrf.mxu1 }
 0x27d   :  { %1018 = vmatpush1.bf16.msra.mxu0 %v2924_v9  ;;  %2326 = vmatpush3.bf16.msra.mxu1 %v2952_v18  ;;  %v858_v9 = vpop.f32.mrf.mxu0 }
 0x27e   :  { %1019 = vmatprep.subr.bf16.mxu0 %v2929_v11  ;;  %2327 = vmatprep.subr.bf16.mxu1 %v3840_v58  ;;  %v1010_v11 = vld [vmem:[#allocation3 + $0xc] sm:$0xf] }
 0x281   :  { %1020 = vmatpush1.bf16.msra.mxu0 %v2936_v13  ;;  %2328 = vmatpush3.bf16.msra.mxu1 %v2962_v21  ;;  %v3850_v13 = vld [vmem:[#allocation17_spill] sm:$0xff] }
 0x282   :  { %1021 = vmatprep.subr.bf16.mxu0 %v2939_v14  ;;  %2329 = vmatprep.subr.bf16.mxu1 %v3840_v58  ;;  %v3851_v14 = vld [vmem:[#allocation18_spill] sm:$0xff] }
 0x285   :  { %1022 = vmatpush1.bf16.msra.mxu0 %v2946_v16  ;;  %2330 = vmatpush3.bf16.msra.mxu1 %v2972_v24 }
 0x286   :  { %1023 = vmatprep.subr.bf16.mxu0 %v2949_v17  ;;  %2331 = vmatprep.subr.bf16.mxu1 %v3840_v58 }
 0x289   :  { %1024 = vmatpush1.bf16.msra.mxu0 %v2956_v19  ;;  %2332 = vmatpush3.bf16.msra.mxu1 %v2982_v28 }
 0x28a   :  { %1025 = vmatprep.subr.bf16.mxu0 %v2959_v20  ;;  %2333 = vmatprep.subr.bf16.mxu1 %v3840_v58 }
 0x28d   :  { %1026 = vmatpush1.bf16.msra.mxu0 %v2966_v22  ;;  %2334 = vmatpush3.bf16.msra.mxu1 %v2993_v31 }
 0x28e   :  { %1092 = vmatprep.subr.bf16.mxu0 %v2969_v23  ;;  %2339 = vmatprep.subr.bf16.mxu1 %v3840_v58 }
 0x290   :  { %1044 = vmatmul.mubr.bf16.vlgmr.msra.gmra.mxu0 %v1010_v11  ;;  %2336 = vmatmul.mubr.bf16.vlgmr.msra.gmra.mxu1 %v1010_v11 }
 0x291   :  { %1093 = vmatpush1.bf16.msra.mxu0 %v2976_v26  ;;  %2340 = vmatpush3.bf16.msra.mxu1 %v3003_v34 }
 0x292   :  { %1094 = vmatprep.subr.bf16.mxu0 %v2979_v27  ;;  %2341 = vmatprep.subr.bf16.mxu1 %v3840_v58 }
 0x293   :  { %1124 = vmatprep.mubr.bf16.mxu0 %v3841_v25  ;;  %2355 = vmatprep.mubr.msk.bf16.mxu1 %vm2843_vm0, %v3840_v58 }
 0x295   :  { %1095 = vmatpush1.bf16.msra.mxu0 %v2986_v29  ;;  %2342 = vmatpush3.bf16.msra.mxu1 %v3013_v37 }
 0x296   :  { %1096 = vmatprep.subr.bf16.mxu0 %v2990_v30  ;;  %2343 = vmatprep.subr.bf16.mxu1 %v3840_v58 }
 0x299   :  { %1097 = vmatpush1.bf16.msra.mxu0 %v2997_v32  ;;  %2344 = vmatpush3.bf16.msra.mxu1 %v3025_v40 }
 0x29a   :  { %1098 = vmatprep.subr.bf16.mxu0 %v3000_v33  ;;  %2345 = vmatprep.subr.bf16.mxu1 %v3840_v58 }
 0x29d   :  { %1099 = vmatpush1.bf16.msra.mxu0 %v3007_v35  ;;  %2346 = vmatpush3.bf16.msra.mxu1 %v3035_v43 }
 0x29e   :  { %1100 = vmatprep.subr.bf16.mxu0 %v3010_v36  ;;  %2347 = vmatprep.subr.bf16.mxu1 %v3840_v58 }
 0x2a1   :  { %1101 = vmatpush1.bf16.msra.mxu0 %v3019_v38  ;;  %2348 = vmatpush3.bf16.msra.mxu1 %v3849_v12 }
 0x2a2   :  { %1102 = vmatprep.subr.bf16.mxu0 %v3850_v13  ;;  %2349 = vmatprep.subr.bf16.mxu1 %v3840_v58 }
 0x2a5   :  { %1103 = vmatpush1.bf16.msra.mxu0 %v3851_v14  ;;  %2350 = vmatpush3.bf16.msra.mxu1 %v3852_v46 }
 0x2a6   :  { %1104 = vmatprep.subr.bf16.mxu0 %v3853_v62  ;;  %2351 = vmatprep.subr.bf16.mxu1 %v3840_v58 }
 0x2a9   :  { %1105 = vmatpush1.bf16.msra.mxu0 %v3854_v1  ;;  %2352 = vmatpush3.bf16.msra.mxu1 %v3855_v45 }
 0x2aa   :  { %1106 = vmatprep.subr.bf16.mxu0 %v3856_v0  ;;  %2353 = vmatprep.subr.bf16.mxu1 %v3840_v58 }
 0x2ad   :  { %1107 = vmatpush1.bf16.msra.mxu0 %v3857_v47  ;;  %2354 = vmatpush3.bf16.msra.mxu1 %v3858_v52 }
 0x2ae   :  { %1203 = vmatprep.subr.bf16.mxu0 %v3859_v44  ;;  %2359 = vmatprep.subr.bf16.mxu1 %v3840_v58 }
 0x330   :  { %v934_v48 = vpop.f32.mrf.mxu0  ;;  %v975_v63 = vpop.f32.mrf.mxu1 }
 0x331   :  { %v981_v42 = vadd.f32 %v934_v48, %v853_v3  ;;  %v998_v11 = vadd.f32 %v3154_v2, %v975_v63  ;;  %v997_v48 = vadd.f32 %v3160_v51, %v3281_v4  ;;  %v3332_v63 = vld [vmem:[#allocation8 + $0xa8] ss:$12 sps:$4 sm:$0xff]   ;;  %v3335_v4 = vld [vmem:[#allocation8 + $0xb0] ss:$12 sps:$4 sm:$0xff]  }
 0x332   :  { %v936_v50 = vpop.f32.mrf.mxu0  ;;  %v2317_v56 = vpop.f32.mrf.mxu1 }
 0x333   :  { %v983_v49 = vadd.f32 %v981_v42, %v3145_v53  ;;  %v982_v57 = vadd.f32 %v936_v50, %v855_v5 }
 0x334   :  { %v938_v41 = vpop.f32.mrf.mxu0  ;;  %v978_v54 = vpop.f32.mrf.mxu1 }
 0x335   :  { %v2043_v55 = vmul.f32 -1.442695, %v983_v49  ;;  %v984_v6 = vadd.f32 %v982_v57, %v3148_v60 }
 0x336   :  { %v939_v59 = vpop.f32.mrf.mxu0  ;;  %v2318_v39 = vpop.f32.mrf.mxu1 }
 0x337   :  { %2615 = vpow2.f32 %v2043_v55  ;;  %v2044_v7 = vmul.f32 -1.442695, %v984_v6  ;;  %v3338_v59 = vld [vmem:[#allocation8 + $0x94] ss:$12 sps:$4 sm:$0xff]   ;;  %v3348_v39 = vld [vmem:[#allocation8 + $0x98] ss:$12 sps:$4 sm:$0xff]  }
 0x338   :  { %v3351_v6 = vld [vmem:[#allocation8 + $0x7c] ss:$12 sps:$4 sm:$0xff]  }
 0x339   :  { %2617 = vpow2.f32 %v2044_v7  ;;  %v3355_v7 = vld [vmem:[#allocation8 + $0x78] ss:$12 sps:$4 sm:$0xff]  }
 0x344   :  { %v2616_v8 = vpop.eup %2615 }
 0x345   :  { %v991_v9 = vadd.f32 1.0, %v2616_v8  ;;  %v3359_v8 = vld [vmem:[#allocation8 + $0x64] ss:$12 sps:$4 sm:$0xff]  }
 0x346   :  { %v2618_v10 = vpop.eup %2617 }
 0x347   :  { %2619 = vrcp.f32 %v991_v9  ;;  %v992_v3 = vadd.f32 1.0, %v2618_v10  ;;  %v3363_v9 = vld [vmem:[#allocation8 + $0x60] ss:$12 sps:$4 sm:$0xff]  }
 0x348   :  { %v3367_v10 = vld [vmem:[#allocation8 + $0x4c] ss:$12 sps:$4 sm:$0xff]  }
 0x349   :  { %2621 = vrcp.f32 %v992_v3  ;;  %v3371_v3 = vld [vmem:[#allocation8 + $0x48] ss:$12 sps:$4 sm:$0xff]  }
 0x354   :  { %v2620_v44 = vpop.eup %2619 }
 0x355   :  { %v999_v42 = vmul.f32 %v2620_v44, %v998_v11 }
 0x356   :  { %v2622_v50 = vpop.eup %2621 }
 0x357   :  { %v1000_v5 = vadd.f32 %v999_v42, %v997_v48  ;;  %v1002_v56 = vsub.f32 1.0, %v2622_v50  ;;  %v1004_v54 = vmul.f32 %v2622_v50, %v3246_v61  ;;  %v3345_v61 = vld [vmem:[#allocation8 + $0x90] ss:$12 sps:$4 sm:$0xff]  }
 0x359   :  { %2623 = vtanh.f32 %v1000_v5 }
 0x366   :  { %v2624_v49 = vpop.eup %2623 }
 0x367   :  { %v1003_v41 = vmul.f32 %v2624_v49, %v1002_v56  ;;  %v3452_v56 = vld [vmem:[#allocation8 + $0x80] ss:$12 sps:$4 sm:$0xff]   ;;  %v3458_v49 = vld [vmem:[#allocation8 + $0x68] ss:$12 sps:$4 sm:$0xff]  }
 0x369   :  { %v3328_v55 = vadd.f32 %v1004_v54, %v1003_v41  ;;  %v3464_v41 = vld [vmem:[#allocation8 + $0x50] ss:$12 sps:$4 sm:$0xff]  }
 0x36a   :  { %v3469_v54 = vld [vmem:[#allocation8 + $0x30] ss:$12 sps:$4 sm:$0xff]  }
 0x36b   :  { %v1006_v57 = vpack.c.bf16 %v3328_v55, %v3328_v55 }
 0x36d   :  { %1008 = vst [vmem:[#allocation11 + $0x8] sm:$0xf] %v1006_v57  ;;  %1125 = vmatmul.mubr.bf16.vlgmr.msra.gmra.mxu0 %v1006_v57  ;;  %2356 = vmatmul.mubr.bf16.vlgmr.msra.gmra.mxu1 %v1006_v57  ;;  %v3475_v57 = vld [vmem:[#allocation8 + $0x1c] ss:$12 sps:$4 sm:$0xff]  }
 0x36e   :  { %1204 = vmatpush1.bf16.msra.mxu0 %v3332_v63  ;;  %2360 = vmatpush3.bf16.msra.mxu1 %v3335_v4 }
 0x36f   :  { %1205 = vmatprep.subr.bf16.mxu0 %v3338_v59  ;;  %2361 = vmatprep.subr.bf16.mxu1 %v3840_v58 }
 0x370   :  { %1235 = vmatprep.mubr.bf16.mxu0 %v3841_v25  ;;  %2375 = vmatprep.mubr.msk.bf16.mxu1 %vm2843_vm0, %v3840_v58 }
 0x372   :  { %1206 = vmatpush1.bf16.msra.mxu0 %v3345_v61  ;;  %2362 = vmatpush3.bf16.msra.mxu1 %v3348_v39 }
 0x373   :  { %1207 = vmatprep.subr.bf16.mxu0 %v3351_v6  ;;  %2363 = vmatprep.subr.bf16.mxu1 %v3840_v58 }
 0x376   :  { %1208 = vmatpush1.bf16.msra.mxu0 %v3355_v7  ;;  %2364 = vmatpush3.bf16.msra.mxu1 %v2942_v15  ;;  %v3375_v15 = vld [vmem:[#allocation8 + $0x34] ss:$12 sps:$4 sm:$0xff]  }
 0x377   :  { %1209 = vmatprep.subr.bf16.mxu0 %v3359_v8  ;;  %2365 = vmatprep.subr.bf16.mxu1 %v3840_v58 }
 0x37a   :  { %1210 = vmatpush1.bf16.msra.mxu0 %v3363_v9  ;;  %2366 = vmatpush3.bf16.msra.mxu1 %v2952_v18  ;;  %v1045_v18 = vpop.f32.mrf.mxu0 }
 0x37b   :  { %1211 = vmatprep.subr.bf16.mxu0 %v3367_v10  ;;  %2367 = vmatprep.subr.bf16.mxu1 %v3840_v58 }
 0x37c   :  { %v1047_v11 = vpop.f32.mrf.mxu0 }
 0x37e   :  { %1212 = vmatpush1.bf16.msra.mxu0 %v3371_v3  ;;  %2368 = vmatpush3.bf16.msra.mxu1 %v2962_v21  ;;  %v3387_v21 = vpop.f32.mrf.mxu1 }
 0x37f   :  { %1213 = vmatprep.subr.bf16.mxu0 %v3375_v15  ;;  %2369 = vmatprep.subr.bf16.mxu1 %v3840_v58 }
 0x380   :  { %v2337_v44 = vpop.f32.mrf.mxu1 }
 0x382   :  { %1214 = vmatpush1.bf16.msra.mxu0 %v2946_v16  ;;  %2370 = vmatpush3.bf16.msra.mxu1 %v2972_v24  ;;  %v1049_v16 = vpop.f32.mrf.mxu0 }
 0x383   :  { %1215 = vmatprep.subr.bf16.mxu0 %v2949_v17  ;;  %2371 = vmatprep.subr.bf16.mxu1 %v3840_v58  ;;  %v1089_v17 = vpop.f32.mrf.mxu1 }
 0x385   :  { %v2338_v24 = vpop.f32.mrf.mxu1 }
 0x386   :  { %1216 = vmatpush1.bf16.msra.mxu0 %v2956_v19  ;;  %2372 = vmatpush3.bf16.msra.mxu1 %v2982_v28  ;;  %v1050_v19 = vpop.f32.mrf.mxu0  ;;  %v3495_v24 = vld [vmem:[#allocation8] ss:$12 sps:$4 sm:$0xff]  }
 0x387   :  { %1217 = vmatprep.subr.bf16.mxu0 %v2959_v20  ;;  %2373 = vmatprep.subr.bf16.mxu1 %v3840_v58  ;;  %v1202_v20 = vld [vmem:[#allocation3 + $0x10] sm:$0xf] }
 0x38a   :  { %1218 = vmatpush1.bf16.msra.mxu0 %v2966_v22  ;;  %2374 = vmatpush3.bf16.msra.mxu1 %v2993_v31  ;;  %v3426_v22 = vld [vmem:[#allocation8 + $0xac] ss:$12 sps:$4 sm:$0xff]  }
 0x38b   :  { %1284 = vmatprep.subr.bf16.mxu0 %v2969_v23  ;;  %2379 = vmatprep.subr.bf16.mxu1 %v3840_v58  ;;  %3860 = vst [vmem:[#allocation22_spill] sm:$0xff] %v3426_v22 }
 0x38d   :  { %1236 = vmatmul.mubr.bf16.vlgmr.msra.gmra.mxu0 %v1202_v20  ;;  %2376 = vmatmul.mubr.bf16.vlgmr.msra.gmra.mxu1 %v1202_v20  ;;  %v3498_v20 = vld [vmem:[#allocation8 + $0x8] ss:$12 sps:$4 sm:$0xff]  }
 0x38e   :  { %1285 = vmatpush1.bf16.msra.mxu0 %v2976_v26  ;;  %2380 = vmatpush3.bf16.msra.mxu1 %v3003_v34 }
 0x38f   :  { %1286 = vmatprep.subr.bf16.mxu0 %v2979_v27  ;;  %2381 = vmatprep.subr.bf16.mxu1 %v3840_v58 }
 0x390   :  { %1316 = vmatprep.mubr.bf16.mxu0 %v3841_v25  ;;  %2395 = vmatprep.mubr.msk.bf16.mxu1 %vm2843_vm0, %v3840_v58 }
 0x392   :  { %1287 = vmatpush1.bf16.msra.mxu0 %v2986_v29  ;;  %2382 = vmatpush3.bf16.msra.mxu1 %v3013_v37 }
 0x393   :  { %1288 = vmatprep.subr.bf16.mxu0 %v2990_v30  ;;  %2383 = vmatprep.subr.bf16.mxu1 %v3840_v58 }
 0x396   :  { %1289 = vmatpush1.bf16.msra.mxu0 %v2997_v32  ;;  %2384 = vmatpush3.bf16.msra.mxu1 %v3025_v40 }
 0x397   :  { %1290 = vmatprep.subr.bf16.mxu0 %v3000_v33  ;;  %2385 = vmatprep.subr.bf16.mxu1 %v3840_v58 }
 0x39a   :  { %1291 = vmatpush1.bf16.msra.mxu0 %v3007_v35  ;;  %2386 = vmatpush3.bf16.msra.mxu1 %v3035_v43 }
 0x39b   :  { %1292 = vmatprep.subr.bf16.mxu0 %v3010_v36  ;;  %2387 = vmatprep.subr.bf16.mxu1 %v3840_v58 }
 0x39e   :  { %1293 = vmatpush1.bf16.msra.mxu0 %v3019_v38  ;;  %2388 = vmatpush3.bf16.msra.mxu1 %v3849_v12 }
 0x39f   :  { %1294 = vmatprep.subr.bf16.mxu0 %v3850_v13  ;;  %2389 = vmatprep.subr.bf16.mxu1 %v3840_v58 }
 0x3a2   :  { %1295 = vmatpush1.bf16.msra.mxu0 %v3851_v14  ;;  %2390 = vmatpush3.bf16.msra.mxu1 %v3852_v46 }
 0x3a3   :  { %1296 = vmatprep.subr.bf16.mxu0 %v3853_v62  ;;  %2391 = vmatprep.subr.bf16.mxu1 %v3840_v58  ;;  %v1189_v62 = vadd.f32 %v3160_v51, %v3387_v21  ;;  %v3482_v21 = vld [vmem:[#allocation8 + $0x20] ss:$12 sps:$4 sm:$0xff]  }
 0x3a6   :  { %1297 = vmatpush1.bf16.msra.mxu0 %v3854_v1  ;;  %2392 = vmatpush3.bf16.msra.mxu1 %v3855_v45 }
 0x3a7   :  { %1298 = vmatprep.subr.bf16.mxu0 %v3856_v0  ;;  %2393 = vmatprep.subr.bf16.mxu1 %v3840_v58 }
 0x3aa   :  { %1299 = vmatpush1.bf16.msra.mxu0 %v3857_v47  ;;  %2394 = vmatpush3.bf16.msra.mxu1 %v3858_v52 }
 0x3ab   :  { %1395 = vmatprep.subr.bf16.mxu0 %v3426_v22  ;;  %2399 = vmatprep.subr.bf16.mxu1 %v3840_v58 }
 0x42d   :  { %v1126_v23 = vpop.f32.mrf.mxu0  ;;  %v1167_v26 = vpop.f32.mrf.mxu1 }
 0x42e   :  { %v1173_v27 = vadd.f32 %v1126_v23, %v1045_v18  ;;  %v1190_v14 = vadd.f32 %v3154_v2, %v1167_v26  ;;  %v3479_v18 = vld [vmem:[#allocation8 + $0x18] ss:$12 sps:$4 sm:$0xff]  }
 0x42f   :  { %v1128_v28 = vpop.f32.mrf.mxu0  ;;  %v2357_v29 = vpop.f32.mrf.mxu1  ;;  %v3501_v23 = vld [vmem:[#allocation9 + $0xac] ss:$12 sps:$4 sm:$0xff]  }
 0x430   :  { %v1175_v30 = vadd.f32 %v1173_v27, %v3145_v53  ;;  %v1174_v34 = vadd.f32 %v1128_v28, %v1047_v11  ;;  %v3485_v11 = vld [vmem:[#allocation8 + $0x4] ss:$12 sps:$4 sm:$0xff]  }
 0x431   :  { %v1130_v31 = vpop.f32.mrf.mxu0  ;;  %v1170_v32 = vpop.f32.mrf.mxu1 }
 0x432   :  { %v2045_v33 = vmul.f32 -1.442695, %v1175_v30  ;;  %v1176_v37 = vadd.f32 %v1174_v34, %v3148_v60  ;;  %v1394_v30 = vld [vmem:[#allocation3 + $0x14] sm:$0xf]  ;;  %v3505_v31 = vld [vmem:[#allocation9 + $0xa8] ss:$12 sps:$4 sm:$0xff]  }
 0x433   :  { %v1131_v35 = vpop.f32.mrf.mxu0  ;;  %v2358_v36 = vpop.f32.mrf.mxu1  ;;  %v3508_v32 = vld [vmem:[#allocation9 + $0xb0] ss:$12 sps:$4 sm:$0xff]  }
 0x434   :  { %2625 = vpow2.f32 %v2045_v33  ;;  %v2046_v38 = vmul.f32 -1.442695, %v1176_v37  ;;  %v3511_v33 = vld [vmem:[#allocation9 + $0x94] ss:$12 sps:$4 sm:$0xff]   ;;  %v3518_v34 = vld [vmem:[#allocation9 + $0x90] ss:$12 sps:$4 sm:$0xff]  }
 0x435   :  { %v3521_v35 = vld [vmem:[#allocation9 + $0x98] ss:$12 sps:$4 sm:$0xff]   ;;  %v3524_v36 = vld [vmem:[#allocation9 + $0x7c] ss:$12 sps:$4 sm:$0xff]  }
 0x436   :  { %2627 = vpow2.f32 %v2046_v38  ;;  %v3528_v37 = vld [vmem:[#allocation9 + $0x78] ss:$12 sps:$4 sm:$0xff]   ;;  %v3531_v38 = vld [vmem:[#allocation9 + $0x80] ss:$12 sps:$4 sm:$0xff]  }
 0x441   :  { %v2626_v40 = vpop.eup %2625 }
 0x442   :  { %v1183_v43 = vadd.f32 1.0, %v2626_v40  ;;  %v3534_v40 = vld [vmem:[#allocation9 + $0x64] ss:$12 sps:$4 sm:$0xff]  }
 0x443   :  { %v2628_v12 = vpop.eup %2627 }
 0x444   :  { %2629 = vrcp.f32 %v1183_v43  ;;  %v1184_v13 = vadd.f32 1.0, %v2628_v12  ;;  %v3538_v43 = vld [vmem:[#allocation9 + $0x60] ss:$12 sps:$4 sm:$0xff]   ;;  %v3541_v12 = vld [vmem:[#allocation9 + $0x68] ss:$12 sps:$4 sm:$0xff]  }
 0x446   :  { %2631 = vrcp.f32 %v1184_v13  ;;  %v3544_v13 = vld [vmem:[#allocation9 + $0x4c] ss:$12 sps:$4 sm:$0xff]  }
 0x44d   :  { %v3489_v44 = vpop.f32.mrf.mxu0  ;;  %v3491_v16 = vpop.f32.mrf.mxu1 }
 0x44f   :  { %v3493_v17 = vpop.f32.mrf.mxu0  ;;  %v2377_v19 = vpop.f32.mrf.mxu1 }
 0x451   :  { %v2630_v46 = vpop.eup %2629  ;;  %v1241_v26 = vpop.f32.mrf.mxu0 }
 0x452   :  { %v1191_v1 = vmul.f32 %v2630_v46, %v1190_v14  ;;  %v1281_v27 = vpop.f32.mrf.mxu1  ;;  %v3548_v14 = vld [vmem:[#allocation9 + $0x48] ss:$12 sps:$4 sm:$0xff]   ;;  %v3551_v46 = vld [vmem:[#allocation9 + $0x50] ss:$12 sps:$4 sm:$0xff]  }
 0x453   :  { %v2632_v0 = vpop.eup %2631  ;;  %v1242_v28 = vpop.f32.mrf.mxu0 }
 0x454   :  { %v1192_v45 = vadd.f32 %v1191_v1, %v1189_v62  ;;  %v1194_v47 = vsub.f32 1.0, %v2632_v0  ;;  %v1196_v42 = vmul.f32 %v2632_v0, %v3328_v55  ;;  %v3472_v55 = vld [vmem:[#allocation8 + $0x38] ss:$12 sps:$4 sm:$0xff]   ;;  %v2378_v29 = vpop.f32.mrf.mxu1  ;;  %v3554_v62 = vld [vmem:[#allocation9 + $0x34] ss:$12 sps:$4 sm:$0xff]  }
 0x455   :  { %3861 = vst [vmem:[#allocation17_spill] sm:$0xff] %v3554_v62  ;;  %v3558_v1 = vld [vmem:[#allocation9 + $0x30] ss:$12 sps:$4 sm:$0xff]  }
 0x456   :  { %2633 = vtanh.f32 %v1192_v45  ;;  %3862 = vst [vmem:[#allocation18_spill] sm:$0xff] %v3558_v1  ;;  %v3561_v45 = vld [vmem:[#allocation9 + $0x38] ss:$12 sps:$4 sm:$0xff]   ;;  %v3564_v0 = vld [vmem:[#allocation9 + $0x1c] ss:$12 sps:$4 sm:$0xff]  }
 0x457   :  { %3863 = vst [vmem:[#allocation24_spill] sm:$0xff] %v3561_v45  ;;  %3864 = vst [vmem:[#allocation19_spill] sm:$0xff] %v3564_v0 }
 0x463   :  { %v2634_v52 = vpop.eup %2633 }
 0x464   :  { %v1195_v48 = vmul.f32 %v2634_v52, %v1194_v47  ;;  %v3568_v47 = vld [vmem:[#allocation9 + $0x18] ss:$12 sps:$4 sm:$0xff]   ;;  %v3571_v52 = vld [vmem:[#allocation9 + $0x20] ss:$12 sps:$4 sm:$0xff]  }
 0x465   :  { %3865 = vst [vmem:[#allocation20_spill] sm:$0xff] %v3568_v47  ;;  %3866 = vst [vmem:[#allocation25_spill] sm:$0xff] %v3571_v52 }
 0x466   :  { %v3436_v5 = vadd.f32 %v1196_v42, %v1195_v48  ;;  %v3574_v48 = vld [vmem:[#allocation9 + $0x4] ss:$12 sps:$4 sm:$0xff]   ;;  %v3578_v42 = vld [vmem:[#allocation9] ss:$12 sps:$4 sm:$0xff]  }
 0x467   :  { %3867 = vst [vmem:[#allocation21_spill] sm:$0xff] %v3574_v48  ;;  %3868 = vst [vmem:[#allocation23_spill] sm:$0xff] %v3578_v42 }
 0x468   :  { %v1198_v50 = vpack.c.bf16 %v3436_v5, %v3436_v5 }
 0x46a   :  { %1200 = vst [vmem:[#allocation11 + $0xc] sm:$0xf] %v1198_v50  ;;  %1317 = vmatmul.mubr.bf16.vlgmr.msra.gmra.mxu0 %v1198_v50  ;;  %2396 = vmatmul.mubr.bf16.vlgmr.msra.gmra.mxu1 %v1198_v50  ;;  %v3581_v50 = vld [vmem:[#allocation9 + $0x8] ss:$12 sps:$4 sm:$0xff]  }
 0x46b   :  { %1396 = vmatpush1.bf16.msra.mxu0 %v3332_v63  ;;  %2400 = vmatpush3.bf16.msra.mxu1 %v3335_v4  ;;  %3869 = vst [vmem:[#allocation26_spill] sm:$0xff] %v3581_v50 }
 0x46c   :  { %1397 = vmatprep.subr.bf16.mxu0 %v3338_v59  ;;  %2401 = vmatprep.subr.bf16.mxu1 %v3840_v58 }
 0x46d   :  { %1427 = vmatprep.mubr.bf16.mxu0 %v3841_v25  ;;  %2415 = vmatprep.mubr.msk.bf16.mxu1 %vm2843_vm0, %v3840_v58 }
 0x46f   :  { %1398 = vmatpush1.bf16.msra.mxu0 %v3345_v61  ;;  %2402 = vmatpush3.bf16.msra.mxu1 %v3348_v39 }
 0x470   :  { %1399 = vmatprep.subr.bf16.mxu0 %v3351_v6  ;;  %2403 = vmatprep.subr.bf16.mxu1 %v3840_v58 }
 0x473   :  { %1400 = vmatpush1.bf16.msra.mxu0 %v3355_v7  ;;  %2404 = vmatpush3.bf16.msra.mxu1 %v3452_v56 }
 0x474   :  { %1401 = vmatprep.subr.bf16.mxu0 %v3359_v8  ;;  %2405 = vmatprep.subr.bf16.mxu1 %v3840_v58 }
 0x477   :  { %1402 = vmatpush1.bf16.msra.mxu0 %v3363_v9  ;;  %2406 = vmatpush3.bf16.msra.mxu1 %v3458_v49 }
 0x478   :  { %1403 = vmatprep.subr.bf16.mxu0 %v3367_v10  ;;  %2407 = vmatprep.subr.bf16.mxu1 %v3840_v58 }
 0x47b   :  { %1404 = vmatpush1.bf16.msra.mxu0 %v3371_v3  ;;  %2408 = vmatpush3.bf16.msra.mxu1 %v3464_v41 }
 0x47c   :  { %1405 = vmatprep.subr.bf16.mxu0 %v3375_v15  ;;  %2409 = vmatprep.subr.bf16.mxu1 %v3840_v58 }
 0x47f   :  { %1406 = vmatpush1.bf16.msra.mxu0 %v3469_v54  ;;  %2410 = vmatpush3.bf16.msra.mxu1 %v3472_v55 }
 0x480   :  { %1407 = vmatprep.subr.bf16.mxu0 %v3475_v57  ;;  %2411 = vmatprep.subr.bf16.mxu1 %v3840_v58 }
 0x483   :  { %1408 = vmatpush1.bf16.msra.mxu0 %v3479_v18  ;;  %2412 = vmatpush3.bf16.msra.mxu1 %v3482_v21 }
 0x484   :  { %1409 = vmatprep.subr.bf16.mxu0 %v3485_v11  ;;  %2413 = vmatprep.subr.bf16.mxu1 %v3840_v58 }
 0x487   :  { %1410 = vmatpush1.bf16.msra.mxu0 %v3495_v24  ;;  %2414 = vmatpush3.bf16.msra.mxu1 %v3498_v20 }
 0x488   :  { %1476 = vmatprep.subr.bf16.mxu0 %v3501_v23  ;;  %2419 = vmatprep.subr.bf16.mxu1 %v3840_v58 }
 0x48a   :  { %1428 = vmatmul.mubr.bf16.vlgmr.msra.gmra.mxu0 %v1394_v30  ;;  %2416 = vmatmul.mubr.bf16.vlgmr.msra.gmra.mxu1 %v1394_v30 }
 0x48b   :  { %1477 = vmatpush1.bf16.msra.mxu0 %v3505_v31  ;;  %2420 = vmatpush3.bf16.msra.mxu1 %v3508_v32 }
 0x48c   :  { %1478 = vmatprep.subr.bf16.mxu0 %v3511_v33  ;;  %2421 = vmatprep.subr.bf16.mxu1 %v3840_v58 }
 0x48d   :  { %1508 = vmatprep.mubr.bf16.mxu0 %v3841_v25  ;;  %2435 = vmatprep.mubr.msk.bf16.mxu1 %vm2843_vm0, %v3840_v58 }
 0x48f   :  { %1479 = vmatpush1.bf16.msra.mxu0 %v3518_v34  ;;  %2422 = vmatpush3.bf16.msra.mxu1 %v3521_v35 }
 0x490   :  { %1480 = vmatprep.subr.bf16.mxu0 %v3524_v36  ;;  %2423 = vmatprep.subr.bf16.mxu1 %v3840_v58 }
 0x493   :  { %1481 = vmatpush1.bf16.msra.mxu0 %v3528_v37  ;;  %2424 = vmatpush3.bf16.msra.mxu1 %v3531_v38 }
 0x494   :  { %1482 = vmatprep.subr.bf16.mxu0 %v3534_v40  ;;  %2425 = vmatprep.subr.bf16.mxu1 %v3840_v58 }
 0x497   :  { %1483 = vmatpush1.bf16.msra.mxu0 %v3538_v43  ;;  %2426 = vmatpush3.bf16.msra.mxu1 %v3541_v12 }
 0x498   :  { %1484 = vmatprep.subr.bf16.mxu0 %v3544_v13  ;;  %2427 = vmatprep.subr.bf16.mxu1 %v3840_v58 }
 0x49b   :  { %1485 = vmatpush1.bf16.msra.mxu0 %v3548_v14  ;;  %2428 = vmatpush3.bf16.msra.mxu1 %v3551_v46 }
 0x49c   :  { %1486 = vmatprep.subr.bf16.mxu0 %v3554_v62  ;;  %2429 = vmatprep.subr.bf16.mxu1 %v3840_v58 }
 0x49f   :  { %1487 = vmatpush1.bf16.msra.mxu0 %v3558_v1  ;;  %2430 = vmatpush3.bf16.msra.mxu1 %v3561_v45 }
 0x4a0   :  { %1488 = vmatprep.subr.bf16.mxu0 %v3564_v0  ;;  %2431 = vmatprep.subr.bf16.mxu1 %v3840_v58 }
 0x4a3   :  { %1489 = vmatpush1.bf16.msra.mxu0 %v3568_v47  ;;  %2432 = vmatpush3.bf16.msra.mxu1 %v3571_v52 }
 0x4a4   :  { %1490 = vmatprep.subr.bf16.mxu0 %v3574_v48  ;;  %2433 = vmatprep.subr.bf16.mxu1 %v3840_v58 }
 0x4a7   :  { %1491 = vmatpush1.bf16.msra.mxu0 %v3578_v42  ;;  %2434 = vmatpush3.bf16.msra.mxu1 %v3581_v50 }
 0x4a8   :  { %1587 = vmatprep.subr.bf16.mxu0 %v3426_v22  ;;  %2439 = vmatprep.subr.bf16.mxu1 %v3840_v58 }
 0x52a   :  { %v1318_v19 = vpop.f32.mrf.mxu0  ;;  %v1359_v26 = vpop.f32.mrf.mxu1 }
 0x52b   :  { %v1365_v27 = vadd.f32 %v1318_v19, %v3489_v44 }
 0x52c   :  { %v1320_v28 = vpop.f32.mrf.mxu0  ;;  %v2397_v29 = vpop.f32.mrf.mxu1 }
 0x52d   :  { %v1367_v30 = vadd.f32 %v1365_v27, %v3145_v53  ;;  %v1366_v42 = vadd.f32 %v1320_v28, %v3493_v17  ;;  %v1382_v29 = vadd.f32 %v3154_v2, %v1359_v26 }
 0x52e   :  { %v1322_v48 = vpop.f32.mrf.mxu0  ;;  %v1362_v52 = vpop.f32.mrf.mxu1 }
 0x52f   :  { %v2047_v47 = vmul.f32 -1.442695, %v1367_v30  ;;  %v1368_v22 = vadd.f32 %v1366_v42, %v3148_v60  ;;  %v1381_v52 = vadd.f32 %v3160_v51, %v3491_v16 }
 0x530   :  { %v1323_v0 = vpop.f32.mrf.mxu0  ;;  %v2398_v45 = vpop.f32.mrf.mxu1 }
 0x531   :  { %2635 = vpow2.f32 %v2047_v47  ;;  %v2048_v50 = vmul.f32 -1.442695, %v1368_v22 }
 0x533   :  { %2637 = vpow2.f32 %v2048_v50 }
 0x53e   :  { %v2636_v1 = vpop.eup %2635 }
 0x53f   :  { %v1375_v62 = vadd.f32 1.0, %v2636_v1 }
 0x540   :  { %v2638_v44 = vpop.eup %2637 }
 0x541   :  { %2639 = vrcp.f32 %v1375_v62  ;;  %v1376_v19 = vadd.f32 1.0, %v2638_v44  ;;  %v1586_v44 = vld [vmem:[#allocation3 + $0x18] sm:$0xf] }
 0x543   :  { %2641 = vrcp.f32 %v1376_v19  ;;  %v3870_v19 = vld [vmem:[#allocation17_spill] sm:$0xff] }
 0x54a   :  { %v1429_v2 = vpop.f32.mrf.mxu0  ;;  %v3629_v51 = vpop.f32.mrf.mxu1 }
 0x54c   :  { %v2417_v16 = vpop.f32.mrf.mxu1 }
 0x54e   :  { %v2640_v27 = vpop.eup %2639  ;;  %v1473_v26 = vpop.f32.mrf.mxu1 }
 0x54f   :  { %v1383_v48 = vmul.f32 %v2640_v27, %v1382_v29  ;;  %v3871_v29 = vld [vmem:[#allocation18_spill] sm:$0xff]  ;;  %v3872_v27 = vld [vmem:[#allocation24_spill] sm:$0xff] }
 0x550   :  { %v2642_v45 = vpop.eup %2641  ;;  %v2418_v30 = vpop.f32.mrf.mxu1 }
 0x551   :  { %v1384_v17 = vadd.f32 %v1383_v48, %v1381_v52  ;;  %v1386_v0 = vsub.f32 1.0, %v2642_v45  ;;  %v1388_v42 = vmul.f32 %v2642_v45, %v3436_v5  ;;  %v1431_v5 = vpop.f32.mrf.mxu0  ;;  %v3873_v52 = vld [vmem:[#allocation19_spill] sm:$0xff]  ;;  %v3874_v48 = vld [vmem:[#allocation20_spill] sm:$0xff]  ;;  %v3876_v45 = vld [vmem:[#allocation21_spill] sm:$0xff] }
 0x553   :  { %2643 = vtanh.f32 %v1384_v17  ;;  %v1433_v50 = vpop.f32.mrf.mxu0  ;;  %v3875_v17 = vld [vmem:[#allocation25_spill] sm:$0xff] }
 0x555   :  { %v1434_v28 = vpop.f32.mrf.mxu0 }
 0x560   :  { %v2644_v47 = vpop.eup %2643 }
 0x561   :  { %v1387_v22 = vmul.f32 %v2644_v47, %v1386_v0  ;;  %v3877_v0 = vld [vmem:[#allocation23_spill] sm:$0xff]  ;;  %v3878_v47 = vld [vmem:[#allocation26_spill] sm:$0xff] }
 0x563   :  { %v3594_v1 = vadd.f32 %v1388_v42, %v1387_v22  ;;  %v3879_v22 = vld [vmem:[#allocation22_spill] sm:$0xff] }
 0x565   :  { %v1390_v62 = vpack.c.bf16 %v3594_v1, %v3594_v1 }
 0x567   :  { %1392 = vst [vmem:[#allocation11 + $0x10] sm:$0xf] %v1390_v62  ;;  %1509 = vmatmul.mubr.bf16.vlgmr.msra.gmra.mxu0 %v1390_v62  ;;  %2436 = vmatmul.mubr.bf16.vlgmr.msra.gmra.mxu1 %v1390_v62 }
 0x568   :  { %1588 = vmatpush1.bf16.msra.mxu0 %v3332_v63  ;;  %2440 = vmatpush3.bf16.msra.mxu1 %v3335_v4 }
 0x569   :  { %1589 = vmatprep.subr.bf16.mxu0 %v3338_v59  ;;  %2441 = vmatprep.subr.bf16.mxu1 %v3840_v58 }
 0x56a   :  { %1619 = vmatprep.mubr.bf16.mxu0 %v3841_v25  ;;  %2455 = vmatprep.mubr.msk.bf16.mxu1 %vm2843_vm0, %v3840_v58 }
 0x56c   :  { %1590 = vmatpush1.bf16.msra.mxu0 %v3345_v61  ;;  %2442 = vmatpush3.bf16.msra.mxu1 %v3348_v39 }
 0x56d   :  { %1591 = vmatprep.subr.bf16.mxu0 %v3351_v6  ;;  %2443 = vmatprep.subr.bf16.mxu1 %v3840_v58 }
 0x570   :  { %1592 = vmatpush1.bf16.msra.mxu0 %v3355_v7  ;;  %2444 = vmatpush3.bf16.msra.mxu1 %v3452_v56 }
 0x571   :  { %1593 = vmatprep.subr.bf16.mxu0 %v3359_v8  ;;  %2445 = vmatprep.subr.bf16.mxu1 %v3840_v58 }
 0x574   :  { %1594 = vmatpush1.bf16.msra.mxu0 %v3363_v9  ;;  %2446 = vmatpush3.bf16.msra.mxu1 %v3458_v49 }
 0x575   :  { %1595 = vmatprep.subr.bf16.mxu0 %v3367_v10  ;;  %2447 = vmatprep.subr.bf16.mxu1 %v3840_v58 }
 0x578   :  { %1596 = vmatpush1.bf16.msra.mxu0 %v3371_v3  ;;  %2448 = vmatpush3.bf16.msra.mxu1 %v3464_v41 }
 0x579   :  { %1597 = vmatprep.subr.bf16.mxu0 %v3375_v15  ;;  %2449 = vmatprep.subr.bf16.mxu1 %v3840_v58 }
 0x57c   :  { %1598 = vmatpush1.bf16.msra.mxu0 %v3469_v54  ;;  %2450 = vmatpush3.bf16.msra.mxu1 %v3472_v55 }
 0x57d   :  { %1599 = vmatprep.subr.bf16.mxu0 %v3475_v57  ;;  %2451 = vmatprep.subr.bf16.mxu1 %v3840_v58 }
 0x580   :  { %1600 = vmatpush1.bf16.msra.mxu0 %v3479_v18  ;;  %2452 = vmatpush3.bf16.msra.mxu1 %v3482_v21 }
 0x581   :  { %1601 = vmatprep.subr.bf16.mxu0 %v3485_v11  ;;  %2453 = vmatprep.subr.bf16.mxu1 %v3840_v58 }
 0x584   :  { %1602 = vmatpush1.bf16.msra.mxu0 %v3495_v24  ;;  %2454 = vmatpush3.bf16.msra.mxu1 %v3498_v20 }
 0x585   :  { %1668 = vmatprep.subr.bf16.mxu0 %v3501_v23  ;;  %2459 = vmatprep.subr.bf16.mxu1 %v3840_v58 }
 0x587   :  { %1620 = vmatmul.mubr.bf16.vlgmr.msra.gmra.mxu0 %v1586_v44  ;;  %2456 = vmatmul.mubr.bf16.vlgmr.msra.gmra.mxu1 %v1586_v44 }
 0x588   :  { %1669 = vmatpush1.bf16.msra.mxu0 %v3505_v31  ;;  %2460 = vmatpush3.bf16.msra.mxu1 %v3508_v32 }
 0x589   :  { %1670 = vmatprep.subr.bf16.mxu0 %v3511_v33  ;;  %2461 = vmatprep.subr.bf16.mxu1 %v3840_v58 }
 0x58a   :  { %1700 = vmatprep.mubr.bf16.mxu0 %v3841_v25  ;;  %2475 = vmatprep.mubr.msk.bf16.mxu1 %vm2843_vm0, %v3840_v58 }
 0x58c   :  { %1671 = vmatpush1.bf16.msra.mxu0 %v3518_v34  ;;  %2462 = vmatpush3.bf16.msra.mxu1 %v3521_v35 }
 0x58d   :  { %1672 = vmatprep.subr.bf16.mxu0 %v3524_v36  ;;  %2463 = vmatprep.subr.bf16.mxu1 %v3840_v58 }
 0x590   :  { %1673 = vmatpush1.bf16.msra.mxu0 %v3528_v37  ;;  %2464 = vmatpush3.bf16.msra.mxu1 %v3531_v38 }
 0x591   :  { %1674 = vmatprep.subr.bf16.mxu0 %v3534_v40  ;;  %2465 = vmatprep.subr.bf16.mxu1 %v3840_v58 }
 0x594   :  { %1675 = vmatpush1.bf16.msra.mxu0 %v3538_v43  ;;  %2466 = vmatpush3.bf16.msra.mxu1 %v3541_v12 }
 0x595   :  { %1676 = vmatprep.subr.bf16.mxu0 %v3544_v13  ;;  %2467 = vmatprep.subr.bf16.mxu1 %v3840_v58 }
 0x598   :  { %1677 = vmatpush1.bf16.msra.mxu0 %v3548_v14  ;;  %2468 = vmatpush3.bf16.msra.mxu1 %v3551_v46 }
 0x599   :  { %1678 = vmatprep.subr.bf16.mxu0 %v3870_v19  ;;  %2469 = vmatprep.subr.bf16.mxu1 %v3840_v58 }
 0x59c   :  { %1679 = vmatpush1.bf16.msra.mxu0 %v3871_v29  ;;  %2470 = vmatpush3.bf16.msra.mxu1 %v3872_v27 }
 0x59d   :  { %1680 = vmatprep.subr.bf16.mxu0 %v3873_v52  ;;  %2471 = vmatprep.subr.bf16.mxu1 %v3840_v58 }
 0x5a0   :  { %1681 = vmatpush1.bf16.msra.mxu0 %v3874_v48  ;;  %2472 = vmatpush3.bf16.msra.mxu1 %v3875_v17 }
 0x5a1   :  { %1682 = vmatprep.subr.bf16.mxu0 %v3876_v45  ;;  %2473 = vmatprep.subr.bf16.mxu1 %v3840_v58 }
 0x5a4   :  { %1683 = vmatpush1.bf16.msra.mxu0 %v3877_v0  ;;  %2474 = vmatpush3.bf16.msra.mxu1 %v3878_v47 }
 0x5a5   :  { %1779 = vmatprep.subr.bf16.mxu0 %v3879_v22  ;;  %2479 = vmatprep.subr.bf16.mxu1 %v3840_v58 }
 0x627   :  { %v1510_v42 = vpop.f32.mrf.mxu0  ;;  %v1551_v62 = vpop.f32.mrf.mxu1 }
 0x628   :  { %v1557_v16 = vadd.f32 %v1510_v42, %v1429_v2  ;;  %v3675_v42 = vld [vmem:[%s3782_s6] ss:$0 sm:$0xff] }
 0x629   :  { %v1512_v50 = vpop.f32.mrf.mxu0  ;;  %v2437_v26 = vpop.f32.mrf.mxu1 }
 0x62a   :  { %v1559_v28 = vadd.f32 %v1557_v16, %v3145_v53  ;;  %v1558_v17 = vadd.f32 %v1512_v50, %v1431_v5  ;;  %v1574_v16 = vadd.f32 %v3675_v42, %v1551_v62 }
 0x62b   :  { %v1514_v30 = vpop.f32.mrf.mxu0  ;;  %v1554_v44 = vpop.f32.mrf.mxu1 }
 0x62c   :  { %v2049_v45 = vmul.f32 -1.442695, %v1559_v28  ;;  %v1560_v47 = vadd.f32 %v1558_v17, %v3148_v60 }
 0x62d   :  { %v1515_v48 = vpop.f32.mrf.mxu0  ;;  %v2438_v52 = vpop.f32.mrf.mxu1 }
 0x62e   :  { %2645 = vpow2.f32 %v2049_v45  ;;  %v2050_v0 = vmul.f32 -1.442695, %v1560_v47  ;;  %v3681_v52 = vld [vmem:[%s3781_s5] ss:$0 sm:$0xff]  ;;  %s2844_s5 = smov [#allocation11]  }
 0x62f   :  { %v1573_v48 = vadd.f32 %v3681_v52, %v3629_v51  ;;  %s1975_s6 = sshll.u32 %s2844_s5, 4  ;;  %s1976_s6 = int_to_ptr.vmem [resolvable:$true] %s1975_s6 }
 0x630   :  { %2647 = vpow2.f32 %v2050_v0  ;;  %s2805_s30 = scalar_lea.vmem %s1976_s6, 512  ;;  %p2810_p7 = scmp.lt.s32.totalorder %s1976_s6, %s1976_s6 }
 0x631   :  { %p2806_p6 = scmp.ne.s32.totalorder %s1976_s6, %s2805_s30  ;;  %p2811_p8 = scmp.lt.s32.totalorder %s2805_s30, %s2805_s30 }
 0x633   :  { %p2812_p9 = por %p2811_p8, %p2810_p7 }
 0x635   :  { %p2813_p10 = pnand %p2812_p9, %p2806_p6 }
 0x63b   :  { %v2646_v22 = vpop.eup %2645 }
 0x63c   :  { %v1567_v27 = vadd.f32 1.0, %v2646_v22 }
 0x63d   :  { %v2648_v29 = vpop.eup %2647 }
 0x63e   :  { %2649 = vrcp.f32 %v1567_v27  ;;  %v1568_v2 = vadd.f32 1.0, %v2648_v29 }
 0x640   :  { %2651 = vrcp.f32 %v1568_v2 }
 0x64b   :  { %v2650_v5 = vpop.eup %2649 }
 0x64c   :  { %v1575_v17 = vmul.f32 %v2650_v5, %v1574_v16 }
 0x64d   :  { %v2652_v29 = vpop.eup %2651 }
 0x64e   :  { %v1576_v27 = vadd.f32 %v1575_v17, %v1573_v48  ;;  %v1578_v45 = vsub.f32 1.0, %v2652_v29  ;;  %v1580_v50 = vmul.f32 %v2652_v29, %v3594_v1 }
 0x650   :  { %2653 = vtanh.f32 %v1576_v27 }
 0x65d   :  { %v2654_v0 = vpop.eup %2653 }
 0x65e   :  { %v1579_v47 = vmul.f32 %v2654_v0, %v1578_v45 }
 0x660   :  { %v3686_v62 = vadd.f32 %v1580_v50, %v1579_v47 }
 0x662   :  { %v1582_v26 = vpack.c.bf16 %v3686_v62, %v3686_v62 }
 0x664   :  { %1584 = vst [vmem:[#allocation11 + $0x14] sm:$0xf] %v1582_v26  ;;  %1701 = vmatmul.mubr.bf16.vlgmr.msra.gmra.mxu0 %v1582_v26  ;;  %2476 = vmatmul.mubr.bf16.vlgmr.msra.gmra.mxu1 %v1582_v26 }
 0x665   :  { %1780 = vmatpush1.bf16.msra.mxu0 %v3332_v63  ;;  %2480 = vmatpush3.bf16.msra.mxu1 %v3335_v4  ;;  %v1621_v63 = vpop.f32.mrf.mxu0  ;;  %v3721_v4 = vpop.f32.mrf.mxu1 }
 0x666   :  { %1781 = vmatprep.subr.bf16.mxu0 %v3338_v59  ;;  %2481 = vmatprep.subr.bf16.mxu1 %v3840_v58 }
 0x667   :  { %1811 = vmatprep.mubr.bf16.mxu0 %v3841_v25  ;;  %2495 = vmatprep.mubr.msk.bf16.mxu1 %vm2843_vm0, %v3840_v58  ;;  %v1623_v59 = vpop.f32.mrf.mxu0 }
 0x669   :  { %1782 = vmatpush1.bf16.msra.mxu0 %v3345_v61  ;;  %2482 = vmatpush3.bf16.msra.mxu1 %v3348_v39  ;;  %v2457_v61 = vpop.f32.mrf.mxu1  ;;  %v1625_v39 = vpop.f32.mrf.mxu0 }
 0x66a   :  { %1783 = vmatprep.subr.bf16.mxu0 %v3351_v6  ;;  %2483 = vmatprep.subr.bf16.mxu1 %v3840_v58 }
 0x66b   :  { %v1665_v6 = vpop.f32.mrf.mxu1 }
 0x66d   :  { %1784 = vmatpush1.bf16.msra.mxu0 %v3355_v7  ;;  %2484 = vmatpush3.bf16.msra.mxu1 %v3452_v56  ;;  %v1626_v7 = vpop.f32.mrf.mxu0  ;;  %v3884_v56 = vld [vmem:[#allocation25_spill] sm:$0xff] }
 0x66e   :  { %1785 = vmatprep.subr.bf16.mxu0 %v3359_v8  ;;  %2485 = vmatprep.subr.bf16.mxu1 %v3840_v58  ;;  %v2458_v8 = vpop.f32.mrf.mxu1 }
 0x671   :  { %1786 = vmatpush1.bf16.msra.mxu0 %v3363_v9  ;;  %2486 = vmatpush3.bf16.msra.mxu1 %v3458_v49  ;;  %v1778_v9 = vld [vmem:[#allocation3 + $0x1c] sm:$0xf]  ;;  %v3885_v49 = vld [vmem:[#allocation21_spill] sm:$0xff] }
 0x672   :  { %1787 = vmatprep.subr.bf16.mxu0 %v3367_v10  ;;  %2487 = vmatprep.subr.bf16.mxu1 %v3840_v58  ;;  %v3881_v10 = vld [vmem:[#allocation24_spill] sm:$0xff] }
 0x675   :  { %1788 = vmatpush1.bf16.msra.mxu0 %v3371_v3  ;;  %2488 = vmatpush3.bf16.msra.mxu1 %v3464_v41  ;;  %v3882_v3 = vld [vmem:[#allocation19_spill] sm:$0xff] }
 0x676   :  { %1789 = vmatprep.subr.bf16.mxu0 %v3375_v15  ;;  %2489 = vmatprep.subr.bf16.mxu1 %v3840_v58  ;;  %v3883_v15 = vld [vmem:[#allocation20_spill] sm:$0xff]  ;;  %v3886_v41 = vld [vmem:[#allocation23_spill] sm:$0xff] }
 0x679   :  { %1790 = vmatpush1.bf16.msra.mxu0 %v3469_v54  ;;  %2490 = vmatpush3.bf16.msra.mxu1 %v3472_v55  ;;  %v3887_v54 = vld [vmem:[#allocation26_spill] sm:$0xff] }
 0x67a   :  { %1791 = vmatprep.subr.bf16.mxu0 %v3475_v57  ;;  %2491 = vmatprep.subr.bf16.mxu1 %v3840_v58 }
 0x67d   :  { %1792 = vmatpush1.bf16.msra.mxu0 %v3479_v18  ;;  %2492 = vmatpush3.bf16.msra.mxu1 %v3482_v21 }
 0x67e   :  { %1793 = vmatprep.subr.bf16.mxu0 %v3485_v11  ;;  %2493 = vmatprep.subr.bf16.mxu1 %v3840_v58 }
 0x681   :  { %1794 = vmatpush1.bf16.msra.mxu0 %v3495_v24  ;;  %2494 = vmatpush3.bf16.msra.mxu1 %v3498_v20 }
 0x682   :  { %1860 = vmatprep.subr.bf16.mxu0 %v3501_v23  ;;  %2499 = vmatprep.subr.bf16.mxu1 %v3840_v58 }
 0x684   :  { %1812 = vmatmul.mubr.bf16.vlgmr.msra.gmra.mxu0 %v1778_v9  ;;  %2496 = vmatmul.mubr.bf16.vlgmr.msra.gmra.mxu1 %v1778_v9 }
 0x685   :  { %1861 = vmatpush1.bf16.msra.mxu0 %v3505_v31  ;;  %2500 = vmatpush3.bf16.msra.mxu1 %v3508_v32 }
 0x686   :  { %1862 = vmatprep.subr.bf16.mxu0 %v3511_v33  ;;  %2501 = vmatprep.subr.bf16.mxu1 %v3840_v58 }
 0x687   :  { %1892 = vmatprep.mubr.bf16.mxu0 %v3841_v25  ;;  %2515 = vmatprep.mubr.msk.bf16.mxu1 %vm2843_vm0, %v3840_v58  ;;  %v3880_v25 = vld [vmem:[#allocation18_spill] sm:$0xff] }
 0x689   :  { %1863 = vmatpush1.bf16.msra.mxu0 %v3518_v34  ;;  %2502 = vmatpush3.bf16.msra.mxu1 %v3521_v35 }
 0x68a   :  { %1864 = vmatprep.subr.bf16.mxu0 %v3524_v36  ;;  %2503 = vmatprep.subr.bf16.mxu1 %v3840_v58 }
 0x68d   :  { %1865 = vmatpush1.bf16.msra.mxu0 %v3528_v37  ;;  %2504 = vmatpush3.bf16.msra.mxu1 %v3531_v38 }
 0x68e   :  { %1866 = vmatprep.subr.bf16.mxu0 %v3534_v40  ;;  %2505 = vmatprep.subr.bf16.mxu1 %v3840_v58 }
 0x691   :  { %1867 = vmatpush1.bf16.msra.mxu0 %v3538_v43  ;;  %2506 = vmatpush3.bf16.msra.mxu1 %v3541_v12 }
 0x692   :  { %1868 = vmatprep.subr.bf16.mxu0 %v3544_v13  ;;  %2507 = vmatprep.subr.bf16.mxu1 %v3840_v58  ;;  %v1765_v13 = vadd.f32 %v3681_v52, %v3721_v4 }
 0x695   :  { %1869 = vmatpush1.bf16.msra.mxu0 %v3548_v14  ;;  %2508 = vmatpush3.bf16.msra.mxu1 %v3551_v46 }
 0x696   :  { %1870 = vmatprep.subr.bf16.mxu0 %v3870_v19  ;;  %2509 = vmatprep.subr.bf16.mxu1 %v3840_v58 }
 0x699   :  { %1871 = vmatpush1.bf16.msra.mxu0 %v3880_v25  ;;  %2510 = vmatpush3.bf16.msra.mxu1 %v3881_v10 }
 0x69a   :  { %1872 = vmatprep.subr.bf16.mxu0 %v3882_v3  ;;  %2511 = vmatprep.subr.bf16.mxu1 %v3840_v58 }
 0x69d   :  { %1873 = vmatpush1.bf16.msra.mxu0 %v3883_v15  ;;  %2512 = vmatpush3.bf16.msra.mxu1 %v3884_v56 }
 0x69e   :  { %1874 = vmatprep.subr.bf16.mxu0 %v3885_v49  ;;  %2513 = vmatprep.subr.bf16.mxu1 %v3840_v58 }
 0x6a1   :  { %1875 = vmatpush1.bf16.msra.mxu0 %v3886_v41  ;;  %2514 = vmatpush3.bf16.msra.mxu1 %v3887_v54 }
 0x724   :  { %v1702_v55 = vpop.f32.mrf.mxu0  ;;  %v1743_v57 = vpop.f32.mrf.mxu1 }
 0x725   :  { %v1749_v18 = vadd.f32 %v1702_v55, %v1621_v63  ;;  %v1766_v43 = vadd.f32 %v3675_v42, %v1743_v57 }
 0x726   :  { %v1704_v21 = vpop.f32.mrf.mxu0  ;;  %v2477_v11 = vpop.f32.mrf.mxu1 }
 0x727   :  { %v1751_v24 = vadd.f32 %v1749_v18, %v3145_v53  ;;  %v1750_v32 = vadd.f32 %v1704_v21, %v1623_v59 }
 0x728   :  { %v1706_v20 = vpop.f32.mrf.mxu0  ;;  %v1746_v23 = vpop.f32.mrf.mxu1 }
 0x729   :  { %v2051_v31 = vmul.f32 -1.442695, %v1751_v24  ;;  %v1752_v58 = vadd.f32 %v1750_v32, %v3148_v60 }
 0x72a   :  { %v1707_v33 = vpop.f32.mrf.mxu0  ;;  %v2478_v34 = vpop.f32.mrf.mxu1 }
 0x72b   :  { %2655 = vpow2.f32 %v2051_v31  ;;  %v2052_v35 = vmul.f32 -1.442695, %v1752_v58 }
 0x72d   :  { %2657 = vpow2.f32 %v2052_v35 }
 0x738   :  { %v2656_v36 = vpop.eup %2655 }
 0x739   :  { %v1759_v37 = vadd.f32 1.0, %v2656_v36 }
 0x73a   :  { %v2658_v38 = vpop.eup %2657 }
 0x73b   :  { %2659 = vrcp.f32 %v1759_v37  ;;  %v1760_v40 = vadd.f32 1.0, %v2658_v38 }
 0x73d   :  { %2661 = vrcp.f32 %v1760_v40 }
 0x744   :  { %v1813_v2 = vpop.f32.mrf.mxu0  ;;  %v1854_v16 = vpop.f32.mrf.mxu1 }
 0x746   :  { %v1815_v5 = vpop.f32.mrf.mxu0  ;;  %v2497_v48 = vpop.f32.mrf.mxu1 }
 0x748   :  { %v2660_v12 = vpop.eup %2659  ;;  %v1817_v17 = vpop.f32.mrf.mxu0 }
 0x749   :  { %v1767_v14 = vmul.f32 %v2660_v12, %v1766_v43  ;;  %v1857_v27 = vpop.f32.mrf.mxu1 }
 0x74a   :  { %v2662_v1 = vpop.eup %2661  ;;  %v1818_v29 = vpop.f32.mrf.mxu0 }
 0x74b   :  { %v1768_v46 = vadd.f32 %v1767_v14, %v1765_v13  ;;  %v1770_v51 = vsub.f32 1.0, %v2662_v1  ;;  %v1772_v30 = vmul.f32 %v2662_v1, %v3686_v62  ;;  %v2498_v45 = vpop.f32.mrf.mxu1 }
 0x74d   :  { %2663 = vtanh.f32 %v1768_v46 }
 0x75a   :  { %v2664_v19 = vpop.eup %2663 }
 0x75b   :  { %v1771_v28 = vmul.f32 %v2664_v19, %v1770_v51 }
 0x75d   :  { %v1773_v44 = vadd.f32 %v1772_v30, %v1771_v28 }
 0x75f   :  { %v1774_v22 = vpack.c.bf16 %v1773_v44, %v1773_v44 }
 0x761   :  { %1776 = vst [vmem:[#allocation11 + $0x18] sm:$0xf] %v1774_v22  ;;  %1893 = vmatmul.mubr.bf16.vlgmr.msra.gmra.mxu0 %v1774_v22  ;;  %2516 = vmatmul.mubr.bf16.vlgmr.msra.gmra.mxu1 %v1774_v22 }
 0x821   :  { %v1894_v0 = vpop.f32.mrf.mxu0  ;;  %v1935_v47 = vpop.f32.mrf.mxu1 }
 0x822   :  { %v1941_v50 = vadd.f32 %v1894_v0, %v1813_v2  ;;  %v1958_v56 = vadd.f32 %v3675_v42, %v1935_v47 }
 0x823   :  { %v1896_v26 = vpop.f32.mrf.mxu0  ;;  %v2517_v63 = vpop.f32.mrf.mxu1 }
 0x824   :  { %v1943_v62 = vadd.f32 %v1941_v50, %v3145_v53  ;;  %v1942_v39 = vadd.f32 %v1896_v26, %v1815_v5  ;;  %v1957_v53 = vadd.f32 %v3681_v52, %v1854_v16 }
 0x825   :  { %v1898_v4 = vpop.f32.mrf.mxu0  ;;  %v1938_v59 = vpop.f32.mrf.mxu1 }
 0x826   :  { %v2053_v61 = vmul.f32 -1.442695, %v1943_v62  ;;  %v1944_v8 = vadd.f32 %v1942_v39, %v3148_v60 }
 0x827   :  { %v1899_v6 = vpop.f32.mrf.mxu0  ;;  %v2518_v7 = vpop.f32.mrf.mxu1 }
 0x828   :  { %2665 = vpow2.f32 %v2053_v61  ;;  %v2054_v9 = vmul.f32 -1.442695, %v1944_v8 }
 0x82a   :  { %2667 = vpow2.f32 %v2054_v9 }
 0x835   :  { %v2666_v25 = vpop.eup %2665 }
 0x836   :  { %v1951_v10 = vadd.f32 1.0, %v2666_v25 }
 0x837   :  { %v2668_v3 = vpop.eup %2667 }
 0x838   :  { %2669 = vrcp.f32 %v1951_v10  ;;  %v1952_v15 = vadd.f32 1.0, %v2668_v3 }
 0x83a   :  { %2671 = vrcp.f32 %v1952_v15 }
 0x845   :  { %v2670_v49 = vpop.eup %2669 }
 0x846   :  { %v1959_v41 = vmul.f32 %v2670_v49, %v1958_v56 }
 0x847   :  { %v2672_v55 = vpop.eup %2671 }
 0x848   :  { %v1960_v54 = vadd.f32 %v1959_v41, %v1957_v53  ;;  %v1962_v57 = vsub.f32 1.0, %v2672_v55  ;;  %v1964_v21 = vmul.f32 %v2672_v55, %v1773_v44 }
 0x84a   :  { %2673 = vtanh.f32 %v1960_v54 }
 0x857   :  { %v2674_v18 = vpop.eup %2673 }
 0x858   :  { %v1963_v60 = vmul.f32 %v2674_v18, %v1962_v57 }
 0x85a   :  { %v1965_v11 = vadd.f32 %v1964_v21, %v1963_v60 }
 0x85c   :  { %v1966_v24 = vpack.c.bf16 %v1965_v11, %v1965_v11 }
 0x85e   :  { %1968 = vst [vmem:[#allocation11 + $0x1c] sm:$0xf] %v1966_v24 }
 0x85f   :  { %2816 = shalt.err (!%p2813_p10)
}
 0x860   :  { %1981 = dma.vmem_to_hbm [thread:$0]  %s1976_s6, 512, %s3783_s7, [#allocation5], %s2835_s9, %s2835_s9, %s2836_s10  }
 0x861   :  { %2831 = dma.done.wait [#allocation5], 512  }
 0x862   :  { %2832 = vsyncadd [#allocation5], 4294966784 }
 0x863   :  { %1985 = vsyncpa [#allocation4], 1 }
 0x864   :  { %1986 = vsyncpa [#allocation7], 1 }
 0x865   :  { %1987 = vsyncpa [#allocation10], 1 }
 0x866   :  { %1988 = vsyncpa [#allocation5], 1 }

</bundles_post_ra>
